<compile_context>
chip_gen: v6e
topology: v6e:2x2x1
jax: 0.10.0
libtpu: 0.0.40
codegen_flags: <defaults>
</compile_context>

<pallas_src>
import functools
import math

import jax
import jax.numpy as jnp
from jax.experimental import pallas as pl
from jax.experimental.pallas import tpu as pltpu


# ----------------------------- Pallas kernel --------------------------------
def _log_sequence_encoder_kernel(
    x_ref,            # (B*S, H)   all tokens of all logs, flattened
    mask_ref,         # (B*S, B*S) additive score mask: 0 same log, -1e30 across logs
    pool_ref,         # (B, B*S)   per-log averaging matrix (1/S inside the log)
    # transformer block 1 (pre-composed / fused weights)
    wqkv1_ref, bqkv1_ref, wo1_ref, bo1_ref, w11_ref, b11_ref, w21_ref, b21_ref,
    # transformer block 2
    wqkv2_ref, bqkv2_ref, wo2_ref, bo2_ref, w12_ref, b12_ref, w22_ref, b22_ref,
    # transformer block 3 (sequence level)
    wqkv3_ref, bqkv3_ref, wo3_ref, bo3_ref, w13_ref, b13_ref, w23_ref, b23_ref,
    o_ref,            # (1, H)
    *, num_seqs, seq_len, num_heads,
):
    H = x_ref.shape[-1]
    hd = H // num_heads
    scale = 1.0 / math.sqrt(hd)

    def transformer_block(xrows, n_rows, mask_bias,
                          wqkv_ref, bqkv_ref, wo_ref, bo_ref,
                          w1_ref, b1_ref, w2_ref, b2_ref):
        # Fused QKV projection (pre-attention Linear already folded into the
        # MHA in_proj on the host): one MXU push, one hoisted bias add.
        qkv = jnp.dot(xrows, wqkv_ref[...],
                      preferred_element_type=jnp.float32) + bqkv_ref[...]
        wo = wo_ref[...]
        # Accumulate out_proj per head -> no per-head lane concat needed.
        attn = jnp.broadcast_to(bo_ref[...], (n_rows, H))
        for h in range(num_heads):
            lo = h * hd
            q_h = qkv[:, lo:lo + hd]
            k_h = qkv[:, H + lo:H + lo + hd]
            v_h = qkv[:, 2 * H + lo:2 * H + lo + hd]
            s = jnp.dot(q_h, k_h.T, preferred_element_type=jnp.float32) * scale
            if mask_bias is not None:
                s = s + mask_bias                    # keep logs independent
            s = s - jnp.max(s, axis=-1, keepdims=True)
            p = jnp.exp(s)
            p = p * pl.reciprocal(jnp.sum(p, axis=-1, keepdims=True), approx=True)
            ctx = jnp.dot(p, v_h, preferred_element_type=jnp.float32)   # (n_rows, hd)
            attn = attn + jnp.dot(ctx, wo[lo:lo + hd, :],
                                  preferred_element_type=jnp.float32)
        # feed-forward: Linear -> ReLU -> Linear
        mid = jnp.dot(attn, w1_ref[...],
                      preferred_element_type=jnp.float32) + b1_ref[...]
        mid = jnp.maximum(mid, 0.0)
        return jnp.dot(mid, w2_ref[...],
                       preferred_element_type=jnp.float32) + b2_ref[...]

    rows = num_seqs * seq_len
    x = x_ref[...]
    mask_bias = mask_ref[...]

    # LogEncoder: two transformer blocks over all (log, token) rows at once.
    h = transformer_block(x, rows, mask_bias,
                          wqkv1_ref, bqkv1_ref, wo1_ref, bo1_ref,
                          w11_ref, b11_ref, w21_ref, b21_ref)
    h = transformer_block(h, rows, mask_bias,
                          wqkv2_ref, bqkv2_ref, wo2_ref, bo2_ref,
                          w12_ref, b12_ref, w22_ref, b22_ref)
    # AdaptiveAvgPool1d(1) over tokens == per-log mean, done on the MXU.
    h = jnp.dot(pool_ref[...], h, preferred_element_type=jnp.float32)   # (B, H)

    # Sequence-level transformer block: PyTorch feeds the (B, H) tensor to
    # nn.MultiheadAttention as ONE un-batched sequence of length B.
    h = transformer_block(h, num_seqs, None,
                          wqkv3_ref, bqkv3_ref, wo3_ref, bo3_ref,
                          w13_ref, b13_ref, w23_ref, b23_ref)

    # Final AdaptiveAvgPool1d(1) over the B logs -> (1, H).
    o_ref[...] = jnp.mean(h, axis=0, keepdims=True).astype(o_ref.dtype)


# ------------------------------- wrapper -------------------------------------
def _fuse_block_params(p):
    """Fold the pre-attention Linear into the MHA in_proj (exact identity) and
    fuse the q/k/v projections into a single (H, 3H) matmul."""
    def compose(w, b, wi, bi):
        return w @ wi, b @ wi + bi
    wq, bq = compose(p["wq"], p["bq"], p["wqi"], p["bqi"])
    wk, bk = compose(p["wk"], p["bk"], p["wki"], p["bki"])
    wv, bv = compose(p["wv"], p["bv"], p["wvi"], p["bvi"])
    wqkv = jnp.concatenate([wq, wk, wv], axis=1)      # (H, 3H)
    bqkv = jnp.concatenate([bq, bk, bv], axis=1)      # (1, 3H)
    return [wqkv, bqkv, p["wo"], p["bo"], p["w1"], p["b1"], p["w2"], p["b2"]]


def log_sequence_encoder(x, block_params, num_heads):
    """x: (B, S, H) float32.  block_params: [block1, block2, block3] dicts of
    pre-transposed weights (y = x @ W + b convention).  Returns (H,)."""
    B, S, H = x.shape
    R = B * S

    # Host-side compile-time constants: block-diagonal attention-mask bias
    # (keeps the B logs independent in the fused kernel) and the per-log
    # averaging matrix implementing AdaptiveAvgPool1d(1).
    seq_id = jnp.arange(R, dtype=jnp.int32) // S
    mask_bias = jnp.where(seq_id[:, None] == seq_id[None, :],
                          0.0, -1e30).astype(jnp.float32)
    pool = (jnp.arange(B, dtype=jnp.int32)[:, None]
            == seq_id[None, :]).astype(jnp.float32) / S

    args = [x.reshape(R, H).astype(jnp.float32), mask_bias, pool]
    for p in block_params:
        args += _fuse_block_params(p)

    kernel = functools.partial(_log_sequence_encoder_kernel,
                               num_seqs=B, seq_len=S, num_heads=num_heads)
    vmem = pl.BlockSpec(memory_space=pltpu.MemorySpace.VMEM)

    out = pl.pallas_call(        # single grid-less invocation: whole forward fused
        kernel,
        out_shape=jax.ShapeDtypeStruct((1, H), jnp.float32),
        in_specs=[vmem] * len(args),
        out_specs=vmem,
    )(*args)
    return out[0]


# --------------------------- pure-JAX reference ------------------------------
def _transformer_block_ref(x, p, num_heads):
    """x: (nseq, L, H).  Faithful TransformerBlock.forward (un-composed weights)."""
    nseq, L, H = x.shape
    hd = H // num_heads
    lin = lambda a, w, b: a @ w + b[0]
    q = lin(x, p["wq"], p["bq"])
    k = lin(x, p["wk"], p["bk"])
    v = lin(x, p["wv"], p["bv"])
    Q = lin(q, p["wqi"], p["bqi"])
    K = lin(k, p["wki"], p["bki"])
    V = lin(v, p["wvi"], p["bvi"])
    Qh = Q.reshape(nseq, L, num_heads, hd).transpose(0, 2, 1, 3)
    Kh = K.reshape(nseq, L, num_heads, hd).transpose(0, 2, 1, 3)
    Vh = V.reshape(nseq, L, num_heads, hd).transpose(0, 2, 1, 3)
    s = jnp.einsum("nhqd,nhkd->nhqk", Qh, Kh) / math.sqrt(hd)
    a = jax.nn.softmax(s, axis=-1)
    ctx = jnp.einsum("nhqk,nhkd->nhqd", a, Vh).transpose(0, 2, 1, 3).reshape(nseq, L, H)
    attn = lin(ctx, p["wo"], p["bo"])
    mid = jax.nn.relu(lin(attn, p["w1"], p["b1"]))
    return lin(mid, p["w2"], p["b2"])


def log_sequence_encoder_ref(x, block_params, num_heads):
    h = _transformer_block_ref(x, block_params[0], num_heads)          # TB1
    h = _transformer_block_ref(h, block_params[1], num_heads)          # TB2
    h = jnp.mean(h, axis=1)                                            # pool: (B, H)
    h = _transformer_block_ref(h[None], block_params[2], num_heads)[0]  # TB3 (un-batched)
    return jnp.mean(h, axis=0)                                         # pool: (H,)


# ------------------------------ param init -----------------------------------
def init_block_params(key, H, DFF):
    names_shapes = [
        ("wq", (H, H)), ("bq", (1, H)),
        ("wk", (H, H)), ("bk", (1, H)),
        ("wv", (H, H)), ("bv", (1, H)),
        ("wqi", (H, H)), ("bqi", (1, H)),
        ("wki", (H, H)), ("bki", (1, H)),
        ("wvi", (H, H)), ("bvi", (1, H)),
        ("wo", (H, H)), ("bo", (1, H)),
        ("w1", (H, DFF)), ("b1", (1, DFF)),
        ("w2", (DFF, H)), ("b2", (1, H)),
    ]
    keys = jax.random.split(key, len(names_shapes))
    params = {}
    for (name, shape), k in zip(names_shapes, keys):
        fan_in = shape[0] if name.startswith("w") else shape[1]
        bound = 1.0 / math.sqrt(fan_in)
        params[name] = jax.random.uniform(k, shape, dtype=jnp.float32,
                                          minval=-bound, maxval=bound)
    return params


# --------------------------------- main ---------------------------------------
if __name__ == "__main__":
    B, S, H, DFF, HEADS = 2, 8, 32, 64, 4     # B logs, S tokens per log, hidden 32

    key = jax.random.PRNGKey(0)
    kx, k1, k2, k3 = jax.random.split(key, 4)
    x = jax.random.normal(kx, (B, S, H), dtype=jnp.float32)
    block_params = [init_block_params(k, H, DFF) for k in (k1, k2, k3)]

    out = jax.block_until_ready(log_sequence_encoder(x, block_params, HEADS))
    ref = log_sequence_encoder_ref(x, block_params, HEADS)

    assert out.shape == (H,)
    err = float(jnp.max(jnp.abs(out - ref)))
    # approx-reciprocal softmax + host-side weight pre-composition perturb f32
    # rounding slightly; structural bugs show up orders of magnitude larger.
    assert err < 3e-3, f"max abs err {err}"
    print("KERNEL_OK")
</pallas_src>

<mosaic_0001>
module attributes {stable_mosaic.version = 11 : i64} {
  func.func @_log_sequence_encoder_kernel(%arg0: memref<16x32xf32, #tpu.memory_space<vmem>>, %arg1: memref<16x16xf32, #tpu.memory_space<vmem>>, %arg2: memref<2x16xf32, #tpu.memory_space<vmem>>, %arg3: memref<32x96xf32, #tpu.memory_space<vmem>>, %arg4: memref<1x96xf32, #tpu.memory_space<vmem>>, %arg5: memref<32x32xf32, #tpu.memory_space<vmem>>, %arg6: memref<1x32xf32, #tpu.memory_space<vmem>>, %arg7: memref<32x64xf32, #tpu.memory_space<vmem>>, %arg8: memref<1x64xf32, #tpu.memory_space<vmem>>, %arg9: memref<64x32xf32, #tpu.memory_space<vmem>>, %arg10: memref<1x32xf32, #tpu.memory_space<vmem>>, %arg11: memref<32x96xf32, #tpu.memory_space<vmem>>, %arg12: memref<1x96xf32, #tpu.memory_space<vmem>>, %arg13: memref<32x32xf32, #tpu.memory_space<vmem>>, %arg14: memref<1x32xf32, #tpu.memory_space<vmem>>, %arg15: memref<32x64xf32, #tpu.memory_space<vmem>>, %arg16: memref<1x64xf32, #tpu.memory_space<vmem>>, %arg17: memref<64x32xf32, #tpu.memory_space<vmem>>, %arg18: memref<1x32xf32, #tpu.memory_space<vmem>>, %arg19: memref<32x96xf32, #tpu.memory_space<vmem>>, %arg20: memref<1x96xf32, #tpu.memory_space<vmem>>, %arg21: memref<32x32xf32, #tpu.memory_space<vmem>>, %arg22: memref<1x32xf32, #tpu.memory_space<vmem>>, %arg23: memref<32x64xf32, #tpu.memory_space<vmem>>, %arg24: memref<1x64xf32, #tpu.memory_space<vmem>>, %arg25: memref<64x32xf32, #tpu.memory_space<vmem>>, %arg26: memref<1x32xf32, #tpu.memory_space<vmem>>, %arg27: memref<1x32xf32, #tpu.memory_space<vmem>>) attributes {dimension_semantics = [], scalar_prefetch = 0 : i64, scratch_operands = 0 : i64, tpu.core_type = #tpu.core_type<tc>} {
    %c0 = arith.constant 0 : index
    %c0_0 = arith.constant 0 : index
    %0 = vector.load %arg0[%c0, %c0_0] : memref<16x32xf32, #tpu.memory_space<vmem>>, vector<16x32xf32>
    %c0_1 = arith.constant 0 : index
    %c0_2 = arith.constant 0 : index
    %1 = vector.load %arg1[%c0_1, %c0_2] : memref<16x16xf32, #tpu.memory_space<vmem>>, vector<16x16xf32>
    %c0_3 = arith.constant 0 : index
    %c0_4 = arith.constant 0 : index
    %2 = vector.load %arg3[%c0_3, %c0_4] : memref<32x96xf32, #tpu.memory_space<vmem>>, vector<32x96xf32>
    %cst = arith.constant dense<0.000000e+00> : vector<16x96xf32>
    %3 = tpu.matmul %0, %2, %cst {dimension_numbers = #tpu.dot_dimension_numbers<[1], [0], [0], [1], [0, 0, 1, 1], [], []>} : vector<16x32xf32>, vector<32x96xf32>, vector<16x96xf32> -> vector<16x96xf32>
    %c0_5 = arith.constant 0 : index
    %c0_6 = arith.constant 0 : index
    %4 = vector.load %arg4[%c0_5, %c0_6] : memref<1x96xf32, #tpu.memory_space<vmem>>, vector<1x96xf32>
    %5 = vector.broadcast %4 : vector<1x96xf32> to vector<16x96xf32>
    %6 = arith.addf %3, %5 : vector<16x96xf32>
    %c0_7 = arith.constant 0 : index
    %c0_8 = arith.constant 0 : index
    %7 = vector.load %arg5[%c0_7, %c0_8] : memref<32x32xf32, #tpu.memory_space<vmem>>, vector<32x32xf32>
    %c0_9 = arith.constant 0 : index
    %c0_10 = arith.constant 0 : index
    %8 = vector.load %arg6[%c0_9, %c0_10] : memref<1x32xf32, #tpu.memory_space<vmem>>, vector<1x32xf32>
    %9 = vector.shape_cast %8 : vector<1x32xf32> to vector<1x32xf32>
    %10 = vector.broadcast %9 : vector<1x32xf32> to vector<16x32xf32>
    %11 = vector.extract_strided_slice %6 {offsets = [0, 0], sizes = [16, 8], strides = [1, 1]} : vector<16x96xf32> to vector<16x8xf32>
    %12 = vector.extract_strided_slice %6 {offsets = [0, 32], sizes = [16, 8], strides = [1, 1]} : vector<16x96xf32> to vector<16x8xf32>
    %13 = vector.extract_strided_slice %6 {offsets = [0, 64], sizes = [16, 8], strides = [1, 1]} : vector<16x96xf32> to vector<16x8xf32>
    %14 = tpu.transpose %12, [1, 0] : vector<16x8xf32> -> vector<8x16xf32>
    %cst_11 = arith.constant dense<0.000000e+00> : vector<16x16xf32>
    %15 = tpu.matmul %11, %14, %cst_11 {dimension_numbers = #tpu.dot_dimension_numbers<[1], [0], [0], [1], [0, 0, 1, 1], [], []>} : vector<16x8xf32>, vector<8x16xf32>, vector<16x16xf32> -> vector<16x16xf32>
    %cst_12 = arith.constant 0.353553385 : f32
    %16 = vector.broadcast %cst_12 : f32 to vector<16x16xf32>
    %17 = arith.mulf %15, %16 : vector<16x16xf32>
    %18 = arith.addf %17, %1 : vector<16x16xf32>
    %cst_13 = arith.constant dense<0xFF800000> : vector<16xf32>
    %19 = vector.multi_reduction <maximumf>, %18, %cst_13 [1] : vector<16x16xf32> to vector<16xf32>
    %20 = vector.shape_cast %19 : vector<16xf32> to vector<16x1xf32>
    %21 = vector.broadcast %20 : vector<16x1xf32> to vector<16x16xf32>
    %22 = arith.subf %18, %21 : vector<16x16xf32>
    %23 = math.exp %22 : vector<16x16xf32>
    %cst_14 = arith.constant dense<0.000000e+00> : vector<16xf32>
    %24 = vector.multi_reduction <add>, %23, %cst_14 [1] : vector<16x16xf32> to vector<16xf32>
    %25 = vector.shape_cast %24 : vector<16xf32> to vector<16x1xf32>
    %26 = tpu.reciprocal %25 {approx = true} : vector<16x1xf32> -> vector<16x1xf32>
    %27 = vector.broadcast %26 : vector<16x1xf32> to vector<16x16xf32>
    %28 = arith.mulf %23, %27 : vector<16x16xf32>
    %cst_15 = arith.constant dense<0.000000e+00> : vector<16x8xf32>
    %29 = tpu.matmul %28, %13, %cst_15 {dimension_numbers = #tpu.dot_dimension_numbers<[1], [0], [0], [1], [0, 0, 1, 1], [], []>} : vector<16x16xf32>, vector<16x8xf32>, vector<16x8xf32> -> vector<16x8xf32>
    %30 = vector.extract_strided_slice %7 {offsets = [0, 0], sizes = [8, 32], strides = [1, 1]} : vector<32x32xf32> to vector<8x32xf32>
    %cst_16 = arith.constant dense<0.000000e+00> : vector<16x32xf32>
    %31 = tpu.matmul %29, %30, %cst_16 {dimension_numbers = #tpu.dot_dimension_numbers<[1], [0], [0], [1], [0, 0, 1, 1], [], []>} : vector<16x8xf32>, vector<8x32xf32>, vector<16x32xf32> -> vector<16x32xf32>
    %32 = arith.addf %10, %31 : vector<16x32xf32>
    %33 = vector.extract_strided_slice %6 {offsets = [0, 8], sizes = [16, 8], strides = [1, 1]} : vector<16x96xf32> to vector<16x8xf32>
    %34 = vector.extract_strided_slice %6 {offsets = [0, 40], sizes = [16, 8], strides = [1, 1]} : vector<16x96xf32> to vector<16x8xf32>
    %35 = vector.extract_strided_slice %6 {offsets = [0, 72], sizes = [16, 8], strides = [1, 1]} : vector<16x96xf32> to vector<16x8xf32>
    %36 = tpu.transpose %34, [1, 0] : vector<16x8xf32> -> vector<8x16xf32>
    %cst_17 = arith.constant dense<0.000000e+00> : vector<16x16xf32>
    %37 = tpu.matmul %33, %36, %cst_17 {dimension_numbers = #tpu.dot_dimension_numbers<[1], [0], [0], [1], [0, 0, 1, 1], [], []>} : vector<16x8xf32>, vector<8x16xf32>, vector<16x16xf32> -> vector<16x16xf32>
    %cst_18 = arith.constant 0.353553385 : f32
    %38 = vector.broadcast %cst_18 : f32 to vector<16x16xf32>
    %39 = arith.mulf %37, %38 : vector<16x16xf32>
    %40 = arith.addf %39, %1 : vector<16x16xf32>
    %cst_19 = arith.constant dense<0xFF800000> : vector<16xf32>
    %41 = vector.multi_reduction <maximumf>, %40, %cst_19 [1] : vector<16x16xf32> to vector<16xf32>
    %42 = vector.shape_cast %41 : vector<16xf32> to vector<16x1xf32>
    %43 = vector.broadcast %42 : vector<16x1xf32> to vector<16x16xf32>
    %44 = arith.subf %40, %43 : vector<16x16xf32>
    %45 = math.exp %44 : vector<16x16xf32>
    %cst_20 = arith.constant dense<0.000000e+00> : vector<16xf32>
    %46 = vector.multi_reduction <add>, %45, %cst_20 [1] : vector<16x16xf32> to vector<16xf32>
    %47 = vector.shape_cast %46 : vector<16xf32> to vector<16x1xf32>
    %48 = tpu.reciprocal %47 {approx = true} : vector<16x1xf32> -> vector<16x1xf32>
    %49 = vector.broadcast %48 : vector<16x1xf32> to vector<16x16xf32>
    %50 = arith.mulf %45, %49 : vector<16x16xf32>
    %cst_21 = arith.constant dense<0.000000e+00> : vector<16x8xf32>
    %51 = tpu.matmul %50, %35, %cst_21 {dimension_numbers = #tpu.dot_dimension_numbers<[1], [0], [0], [1], [0, 0, 1, 1], [], []>} : vector<16x16xf32>, vector<16x8xf32>, vector<16x8xf32> -> vector<16x8xf32>
    %52 = vector.extract_strided_slice %7 {offsets = [8, 0], sizes = [8, 32], strides = [1, 1]} : vector<32x32xf32> to vector<8x32xf32>
    %cst_22 = arith.constant dense<0.000000e+00> : vector<16x32xf32>
    %53 = tpu.matmul %51, %52, %cst_22 {dimension_numbers = #tpu.dot_dimension_numbers<[1], [0], [0], [1], [0, 0, 1, 1], [], []>} : vector<16x8xf32>, vector<8x32xf32>, vector<16x32xf32> -> vector<16x32xf32>
    %54 = arith.addf %32, %53 : vector<16x32xf32>
    %55 = vector.extract_strided_slice %6 {offsets = [0, 16], sizes = [16, 8], strides = [1, 1]} : vector<16x96xf32> to vector<16x8xf32>
    %56 = vector.extract_strided_slice %6 {offsets = [0, 48], sizes = [16, 8], strides = [1, 1]} : vector<16x96xf32> to vector<16x8xf32>
    %57 = vector.extract_strided_slice %6 {offsets = [0, 80], sizes = [16, 8], strides = [1, 1]} : vector<16x96xf32> to vector<16x8xf32>
    %58 = tpu.transpose %56, [1, 0] : vector<16x8xf32> -> vector<8x16xf32>
    %cst_23 = arith.constant dense<0.000000e+00> : vector<16x16xf32>
    %59 = tpu.matmul %55, %58, %cst_23 {dimension_numbers = #tpu.dot_dimension_numbers<[1], [0], [0], [1], [0, 0, 1, 1], [], []>} : vector<16x8xf32>, vector<8x16xf32>, vector<16x16xf32> -> vector<16x16xf32>
    %cst_24 = arith.constant 0.353553385 : f32
    %60 = vector.broadcast %cst_24 : f32 to vector<16x16xf32>
    %61 = arith.mulf %59, %60 : vector<16x16xf32>
    %62 = arith.addf %61, %1 : vector<16x16xf32>
    %cst_25 = arith.constant dense<0xFF800000> : vector<16xf32>
    %63 = vector.multi_reduction <maximumf>, %62, %cst_25 [1] : vector<16x16xf32> to vector<16xf32>
    %64 = vector.shape_cast %63 : vector<16xf32> to vector<16x1xf32>
    %65 = vector.broadcast %64 : vector<16x1xf32> to vector<16x16xf32>
    %66 = arith.subf %62, %65 : vector<16x16xf32>
    %67 = math.exp %66 : vector<16x16xf32>
    %cst_26 = arith.constant dense<0.000000e+00> : vector<16xf32>
    %68 = vector.multi_reduction <add>, %67, %cst_26 [1] : vector<16x16xf32> to vector<16xf32>
    %69 = vector.shape_cast %68 : vector<16xf32> to vector<16x1xf32>
    %70 = tpu.reciprocal %69 {approx = true} : vector<16x1xf32> -> vector<16x1xf32>
    %71 = vector.broadcast %70 : vector<16x1xf32> to vector<16x16xf32>
    %72 = arith.mulf %67, %71 : vector<16x16xf32>
    %cst_27 = arith.constant dense<0.000000e+00> : vector<16x8xf32>
    %73 = tpu.matmul %72, %57, %cst_27 {dimension_numbers = #tpu.dot_dimension_numbers<[1], [0], [0], [1], [0, 0, 1, 1], [], []>} : vector<16x16xf32>, vector<16x8xf32>, vector<16x8xf32> -> vector<16x8xf32>
    %74 = vector.extract_strided_slice %7 {offsets = [16, 0], sizes = [8, 32], strides = [1, 1]} : vector<32x32xf32> to vector<8x32xf32>
    %cst_28 = arith.constant dense<0.000000e+00> : vector<16x32xf32>
    %75 = tpu.matmul %73, %74, %cst_28 {dimension_numbers = #tpu.dot_dimension_numbers<[1], [0], [0], [1], [0, 0, 1, 1], [], []>} : vector<16x8xf32>, vector<8x32xf32>, vector<16x32xf32> -> vector<16x32xf32>
    %76 = arith.addf %54, %75 : vector<16x32xf32>
    %77 = vector.extract_strided_slice %6 {offsets = [0, 24], sizes = [16, 8], strides = [1, 1]} : vector<16x96xf32> to vector<16x8xf32>
    %78 = vector.extract_strided_slice %6 {offsets = [0, 56], sizes = [16, 8], strides = [1, 1]} : vector<16x96xf32> to vector<16x8xf32>
    %79 = vector.extract_strided_slice %6 {offsets = [0, 88], sizes = [16, 8], strides = [1, 1]} : vector<16x96xf32> to vector<16x8xf32>
    %80 = tpu.transpose %78, [1, 0] : vector<16x8xf32> -> vector<8x16xf32>
    %cst_29 = arith.constant dense<0.000000e+00> : vector<16x16xf32>
    %81 = tpu.matmul %77, %80, %cst_29 {dimension_numbers = #tpu.dot_dimension_numbers<[1], [0], [0], [1], [0, 0, 1, 1], [], []>} : vector<16x8xf32>, vector<8x16xf32>, vector<16x16xf32> -> vector<16x16xf32>
    %cst_30 = arith.constant 0.353553385 : f32
    %82 = vector.broadcast %cst_30 : f32 to vector<16x16xf32>
    %83 = arith.mulf %81, %82 : vector<16x16xf32>
    %84 = arith.addf %83, %1 : vector<16x16xf32>
    %cst_31 = arith.constant dense<0xFF800000> : vector<16xf32>
    %85 = vector.multi_reduction <maximumf>, %84, %cst_31 [1] : vector<16x16xf32> to vector<16xf32>
    %86 = vector.shape_cast %85 : vector<16xf32> to vector<16x1xf32>
    %87 = vector.broadcast %86 : vector<16x1xf32> to vector<16x16xf32>
    %88 = arith.subf %84, %87 : vector<16x16xf32>
    %89 = math.exp %88 : vector<16x16xf32>
    %cst_32 = arith.constant dense<0.000000e+00> : vector<16xf32>
    %90 = vector.multi_reduction <add>, %89, %cst_32 [1] : vector<16x16xf32> to vector<16xf32>
    %91 = vector.shape_cast %90 : vector<16xf32> to vector<16x1xf32>
    %92 = tpu.reciprocal %91 {approx = true} : vector<16x1xf32> -> vector<16x1xf32>
    %93 = vector.broadcast %92 : vector<16x1xf32> to vector<16x16xf32>
    %94 = arith.mulf %89, %93 : vector<16x16xf32>
    %cst_33 = arith.constant dense<0.000000e+00> : vector<16x8xf32>
    %95 = tpu.matmul %94, %79, %cst_33 {dimension_numbers = #tpu.dot_dimension_numbers<[1], [0], [0], [1], [0, 0, 1, 1], [], []>} : vector<16x16xf32>, vector<16x8xf32>, vector<16x8xf32> -> vector<16x8xf32>
    %96 = vector.extract_strided_slice %7 {offsets = [24, 0], sizes = [8, 32], strides = [1, 1]} : vector<32x32xf32> to vector<8x32xf32>
    %cst_34 = arith.constant dense<0.000000e+00> : vector<16x32xf32>
    %97 = tpu.matmul %95, %96, %cst_34 {dimension_numbers = #tpu.dot_dimension_numbers<[1], [0], [0], [1], [0, 0, 1, 1], [], []>} : vector<16x8xf32>, vector<8x32xf32>, vector<16x32xf32> -> vector<16x32xf32>
    %98 = arith.addf %76, %97 : vector<16x32xf32>
    %c0_35 = arith.constant 0 : index
    %c0_36 = arith.constant 0 : index
    %99 = vector.load %arg7[%c0_35, %c0_36] : memref<32x64xf32, #tpu.memory_space<vmem>>, vector<32x64xf32>
    %cst_37 = arith.constant dense<0.000000e+00> : vector<16x64xf32>
    %100 = tpu.matmul %98, %99, %cst_37 {dimension_numbers = #tpu.dot_dimension_numbers<[1], [0], [0], [1], [0, 0, 1, 1], [], []>} : vector<16x32xf32>, vector<32x64xf32>, vector<16x64xf32> -> vector<16x64xf32>
    %c0_38 = arith.constant 0 : index
    %c0_39 = arith.constant 0 : index
    %101 = vector.load %arg8[%c0_38, %c0_39] : memref<1x64xf32, #tpu.memory_space<vmem>>, vector<1x64xf32>
    %102 = vector.broadcast %101 : vector<1x64xf32> to vector<16x64xf32>
    %103 = arith.addf %100, %102 : vector<16x64xf32>
    %cst_40 = arith.constant 0.000000e+00 : f32
    %104 = vector.broadcast %cst_40 : f32 to vector<16x64xf32>
    %105 = arith.maximumf %103, %104 : vector<16x64xf32>
    %c0_41 = arith.constant 0 : index
    %c0_42 = arith.constant 0 : index
    %106 = vector.load %arg9[%c0_41, %c0_42] : memref<64x32xf32, #tpu.memory_space<vmem>>, vector<64x32xf32>
    %cst_43 = arith.constant dense<0.000000e+00> : vector<16x32xf32>
    %107 = tpu.matmul %105, %106, %cst_43 {dimension_numbers = #tpu.dot_dimension_numbers<[1], [0], [0], [1], [0, 0, 1, 1], [], []>} : vector<16x64xf32>, vector<64x32xf32>, vector<16x32xf32> -> vector<16x32xf32>
    %c0_44 = arith.constant 0 : index
    %c0_45 = arith.constant 0 : index
    %108 = vector.load %arg10[%c0_44, %c0_45] : memref<1x32xf32, #tpu.memory_space<vmem>>, vector<1x32xf32>
    %109 = vector.broadcast %108 : vector<1x32xf32> to vector<16x32xf32>
    %110 = arith.addf %107, %109 : vector<16x32xf32>
    %c0_46 = arith.constant 0 : index
    %c0_47 = arith.constant 0 : index
    %111 = vector.load %arg11[%c0_46, %c0_47] : memref<32x96xf32, #tpu.memory_space<vmem>>, vector<32x96xf32>
    %cst_48 = arith.constant dense<0.000000e+00> : vector<16x96xf32>
    %112 = tpu.matmul %110, %111, %cst_48 {dimension_numbers = #tpu.dot_dimension_numbers<[1], [0], [0], [1], [0, 0, 1, 1], [], []>} : vector<16x32xf32>, vector<32x96xf32>, vector<16x96xf32> -> vector<16x96xf32>
    %c0_49 = arith.constant 0 : index
    %c0_50 = arith.constant 0 : index
    %113 = vector.load %arg12[%c0_49, %c0_50] : memref<1x96xf32, #tpu.memory_space<vmem>>, vector<1x96xf32>
    %114 = vector.broadcast %113 : vector<1x96xf32> to vector<16x96xf32>
    %115 = arith.addf %112, %114 : vector<16x96xf32>
    %c0_51 = arith.constant 0 : index
    %c0_52 = arith.constant 0 : index
    %116 = vector.load %arg13[%c0_51, %c0_52] : memref<32x32xf32, #tpu.memory_space<vmem>>, vector<32x32xf32>
    %c0_53 = arith.constant 0 : index
    %c0_54 = arith.constant 0 : index
    %117 = vector.load %arg14[%c0_53, %c0_54] : memref<1x32xf32, #tpu.memory_space<vmem>>, vector<1x32xf32>
    %118 = vector.shape_cast %117 : vector<1x32xf32> to vector<1x32xf32>
    %119 = vector.broadcast %118 : vector<1x32xf32> to vector<16x32xf32>
    %120 = vector.extract_strided_slice %115 {offsets = [0, 0], sizes = [16, 8], strides = [1, 1]} : vector<16x96xf32> to vector<16x8xf32>
    %121 = vector.extract_strided_slice %115 {offsets = [0, 32], sizes = [16, 8], strides = [1, 1]} : vector<16x96xf32> to vector<16x8xf32>
    %122 = vector.extract_strided_slice %115 {offsets = [0, 64], sizes = [16, 8], strides = [1, 1]} : vector<16x96xf32> to vector<16x8xf32>
    %123 = tpu.transpose %121, [1, 0] : vector<16x8xf32> -> vector<8x16xf32>
    %cst_55 = arith.constant dense<0.000000e+00> : vector<16x16xf32>
    %124 = tpu.matmul %120, %123, %cst_55 {dimension_numbers = #tpu.dot_dimension_numbers<[1], [0], [0], [1], [0, 0, 1, 1], [], []>} : vector<16x8xf32>, vector<8x16xf32>, vector<16x16xf32> -> vector<16x16xf32>
    %cst_56 = arith.constant 0.353553385 : f32
    %125 = vector.broadcast %cst_56 : f32 to vector<16x16xf32>
    %126 = arith.mulf %124, %125 : vector<16x16xf32>
    %127 = arith.addf %126, %1 : vector<16x16xf32>
    %cst_57 = arith.constant dense<0xFF800000> : vector<16xf32>
    %128 = vector.multi_reduction <maximumf>, %127, %cst_57 [1] : vector<16x16xf32> to vector<16xf32>
    %129 = vector.shape_cast %128 : vector<16xf32> to vector<16x1xf32>
    %130 = vector.broadcast %129 : vector<16x1xf32> to vector<16x16xf32>
    %131 = arith.subf %127, %130 : vector<16x16xf32>
    %132 = math.exp %131 : vector<16x16xf32>
    %cst_58 = arith.constant dense<0.000000e+00> : vector<16xf32>
    %133 = vector.multi_reduction <add>, %132, %cst_58 [1] : vector<16x16xf32> to vector<16xf32>
    %134 = vector.shape_cast %133 : vector<16xf32> to vector<16x1xf32>
    %135 = tpu.reciprocal %134 {approx = true} : vector<16x1xf32> -> vector<16x1xf32>
    %136 = vector.broadcast %135 : vector<16x1xf32> to vector<16x16xf32>
    %137 = arith.mulf %132, %136 : vector<16x16xf32>
    %cst_59 = arith.constant dense<0.000000e+00> : vector<16x8xf32>
    %138 = tpu.matmul %137, %122, %cst_59 {dimension_numbers = #tpu.dot_dimension_numbers<[1], [0], [0], [1], [0, 0, 1, 1], [], []>} : vector<16x16xf32>, vector<16x8xf32>, vector<16x8xf32> -> vector<16x8xf32>
    %139 = vector.extract_strided_slice %116 {offsets = [0, 0], sizes = [8, 32], strides = [1, 1]} : vector<32x32xf32> to vector<8x32xf32>
    %cst_60 = arith.constant dense<0.000000e+00> : vector<16x32xf32>
    %140 = tpu.matmul %138, %139, %cst_60 {dimension_numbers = #tpu.dot_dimension_numbers<[1], [0], [0], [1], [0, 0, 1, 1], [], []>} : vector<16x8xf32>, vector<8x32xf32>, vector<16x32xf32> -> vector<16x32xf32>
    %141 = arith.addf %119, %140 : vector<16x32xf32>
    %142 = vector.extract_strided_slice %115 {offsets = [0, 8], sizes = [16, 8], strides = [1, 1]} : vector<16x96xf32> to vector<16x8xf32>
    %143 = vector.extract_strided_slice %115 {offsets = [0, 40], sizes = [16, 8], strides = [1, 1]} : vector<16x96xf32> to vector<16x8xf32>
    %144 = vector.extract_strided_slice %115 {offsets = [0, 72], sizes = [16, 8], strides = [1, 1]} : vector<16x96xf32> to vector<16x8xf32>
    %145 = tpu.transpose %143, [1, 0] : vector<16x8xf32> -> vector<8x16xf32>
    %cst_61 = arith.constant dense<0.000000e+00> : vector<16x16xf32>
    %146 = tpu.matmul %142, %145, %cst_61 {dimension_numbers = #tpu.dot_dimension_numbers<[1], [0], [0], [1], [0, 0, 1, 1], [], []>} : vector<16x8xf32>, vector<8x16xf32>, vector<16x16xf32> -> vector<16x16xf32>
    %cst_62 = arith.constant 0.353553385 : f32
    %147 = vector.broadcast %cst_62 : f32 to vector<16x16xf32>
    %148 = arith.mulf %146, %147 : vector<16x16xf32>
    %149 = arith.addf %148, %1 : vector<16x16xf32>
    %cst_63 = arith.constant dense<0xFF800000> : vector<16xf32>
    %150 = vector.multi_reduction <maximumf>, %149, %cst_63 [1] : vector<16x16xf32> to vector<16xf32>
    %151 = vector.shape_cast %150 : vector<16xf32> to vector<16x1xf32>
    %152 = vector.broadcast %151 : vector<16x1xf32> to vector<16x16xf32>
    %153 = arith.subf %149, %152 : vector<16x16xf32>
    %154 = math.exp %153 : vector<16x16xf32>
    %cst_64 = arith.constant dense<0.000000e+00> : vector<16xf32>
    %155 = vector.multi_reduction <add>, %154, %cst_64 [1] : vector<16x16xf32> to vector<16xf32>
    %156 = vector.shape_cast %155 : vector<16xf32> to vector<16x1xf32>
    %157 = tpu.reciprocal %156 {approx = true} : vector<16x1xf32> -> vector<16x1xf32>
    %158 = vector.broadcast %157 : vector<16x1xf32> to vector<16x16xf32>
    %159 = arith.mulf %154, %158 : vector<16x16xf32>
    %cst_65 = arith.constant dense<0.000000e+00> : vector<16x8xf32>
    %160 = tpu.matmul %159, %144, %cst_65 {dimension_numbers = #tpu.dot_dimension_numbers<[1], [0], [0], [1], [0, 0, 1, 1], [], []>} : vector<16x16xf32>, vector<16x8xf32>, vector<16x8xf32> -> vector<16x8xf32>
    %161 = vector.extract_strided_slice %116 {offsets = [8, 0], sizes = [8, 32], strides = [1, 1]} : vector<32x32xf32> to vector<8x32xf32>
    %cst_66 = arith.constant dense<0.000000e+00> : vector<16x32xf32>
    %162 = tpu.matmul %160, %161, %cst_66 {dimension_numbers = #tpu.dot_dimension_numbers<[1], [0], [0], [1], [0, 0, 1, 1], [], []>} : vector<16x8xf32>, vector<8x32xf32>, vector<16x32xf32> -> vector<16x32xf32>
    %163 = arith.addf %141, %162 : vector<16x32xf32>
    %164 = vector.extract_strided_slice %115 {offsets = [0, 16], sizes = [16, 8], strides = [1, 1]} : vector<16x96xf32> to vector<16x8xf32>
    %165 = vector.extract_strided_slice %115 {offsets = [0, 48], sizes = [16, 8], strides = [1, 1]} : vector<16x96xf32> to vector<16x8xf32>
    %166 = vector.extract_strided_slice %115 {offsets = [0, 80], sizes = [16, 8], strides = [1, 1]} : vector<16x96xf32> to vector<16x8xf32>
    %167 = tpu.transpose %165, [1, 0] : vector<16x8xf32> -> vector<8x16xf32>
    %cst_67 = arith.constant dense<0.000000e+00> : vector<16x16xf32>
    %168 = tpu.matmul %164, %167, %cst_67 {dimension_numbers = #tpu.dot_dimension_numbers<[1], [0], [0], [1], [0, 0, 1, 1], [], []>} : vector<16x8xf32>, vector<8x16xf32>, vector<16x16xf32> -> vector<16x16xf32>
    %cst_68 = arith.constant 0.353553385 : f32
    %169 = vector.broadcast %cst_68 : f32 to vector<16x16xf32>
    %170 = arith.mulf %168, %169 : vector<16x16xf32>
    %171 = arith.addf %170, %1 : vector<16x16xf32>
    %cst_69 = arith.constant dense<0xFF800000> : vector<16xf32>
    %172 = vector.multi_reduction <maximumf>, %171, %cst_69 [1] : vector<16x16xf32> to vector<16xf32>
    %173 = vector.shape_cast %172 : vector<16xf32> to vector<16x1xf32>
    %174 = vector.broadcast %173 : vector<16x1xf32> to vector<16x16xf32>
    %175 = arith.subf %171, %174 : vector<16x16xf32>
    %176 = math.exp %175 : vector<16x16xf32>
    %cst_70 = arith.constant dense<0.000000e+00> : vector<16xf32>
    %177 = vector.multi_reduction <add>, %176, %cst_70 [1] : vector<16x16xf32> to vector<16xf32>
    %178 = vector.shape_cast %177 : vector<16xf32> to vector<16x1xf32>
    %179 = tpu.reciprocal %178 {approx = true} : vector<16x1xf32> -> vector<16x1xf32>
    %180 = vector.broadcast %179 : vector<16x1xf32> to vector<16x16xf32>
    %181 = arith.mulf %176, %180 : vector<16x16xf32>
    %cst_71 = arith.constant dense<0.000000e+00> : vector<16x8xf32>
    %182 = tpu.matmul %181, %166, %cst_71 {dimension_numbers = #tpu.dot_dimension_numbers<[1], [0], [0], [1], [0, 0, 1, 1], [], []>} : vector<16x16xf32>, vector<16x8xf32>, vector<16x8xf32> -> vector<16x8xf32>
    %183 = vector.extract_strided_slice %116 {offsets = [16, 0], sizes = [8, 32], strides = [1, 1]} : vector<32x32xf32> to vector<8x32xf32>
    %cst_72 = arith.constant dense<0.000000e+00> : vector<16x32xf32>
    %184 = tpu.matmul %182, %183, %cst_72 {dimension_numbers = #tpu.dot_dimension_numbers<[1], [0], [0], [1], [0, 0, 1, 1], [], []>} : vector<16x8xf32>, vector<8x32xf32>, vector<16x32xf32> -> vector<16x32xf32>
    %185 = arith.addf %163, %184 : vector<16x32xf32>
    %186 = vector.extract_strided_slice %115 {offsets = [0, 24], sizes = [16, 8], strides = [1, 1]} : vector<16x96xf32> to vector<16x8xf32>
    %187 = vector.extract_strided_slice %115 {offsets = [0, 56], sizes = [16, 8], strides = [1, 1]} : vector<16x96xf32> to vector<16x8xf32>
    %188 = vector.extract_strided_slice %115 {offsets = [0, 88], sizes = [16, 8], strides = [1, 1]} : vector<16x96xf32> to vector<16x8xf32>
    %189 = tpu.transpose %187, [1, 0] : vector<16x8xf32> -> vector<8x16xf32>
    %cst_73 = arith.constant dense<0.000000e+00> : vector<16x16xf32>
    %190 = tpu.matmul %186, %189, %cst_73 {dimension_numbers = #tpu.dot_dimension_numbers<[1], [0], [0], [1], [0, 0, 1, 1], [], []>} : vector<16x8xf32>, vector<8x16xf32>, vector<16x16xf32> -> vector<16x16xf32>
    %cst_74 = arith.constant 0.353553385 : f32
    %191 = vector.broadcast %cst_74 : f32 to vector<16x16xf32>
    %192 = arith.mulf %190, %191 : vector<16x16xf32>
    %193 = arith.addf %192, %1 : vector<16x16xf32>
    %cst_75 = arith.constant dense<0xFF800000> : vector<16xf32>
    %194 = vector.multi_reduction <maximumf>, %193, %cst_75 [1] : vector<16x16xf32> to vector<16xf32>
    %195 = vector.shape_cast %194 : vector<16xf32> to vector<16x1xf32>
    %196 = vector.broadcast %195 : vector<16x1xf32> to vector<16x16xf32>
    %197 = arith.subf %193, %196 : vector<16x16xf32>
    %198 = math.exp %197 : vector<16x16xf32>
    %cst_76 = arith.constant dense<0.000000e+00> : vector<16xf32>
    %199 = vector.multi_reduction <add>, %198, %cst_76 [1] : vector<16x16xf32> to vector<16xf32>
    %200 = vector.shape_cast %199 : vector<16xf32> to vector<16x1xf32>
    %201 = tpu.reciprocal %200 {approx = true} : vector<16x1xf32> -> vector<16x1xf32>
    %202 = vector.broadcast %201 : vector<16x1xf32> to vector<16x16xf32>
    %203 = arith.mulf %198, %202 : vector<16x16xf32>
    %cst_77 = arith.constant dense<0.000000e+00> : vector<16x8xf32>
    %204 = tpu.matmul %203, %188, %cst_77 {dimension_numbers = #tpu.dot_dimension_numbers<[1], [0], [0], [1], [0, 0, 1, 1], [], []>} : vector<16x16xf32>, vector<16x8xf32>, vector<16x8xf32> -> vector<16x8xf32>
    %205 = vector.extract_strided_slice %116 {offsets = [24, 0], sizes = [8, 32], strides = [1, 1]} : vector<32x32xf32> to vector<8x32xf32>
    %cst_78 = arith.constant dense<0.000000e+00> : vector<16x32xf32>
    %206 = tpu.matmul %204, %205, %cst_78 {dimension_numbers = #tpu.dot_dimension_numbers<[1], [0], [0], [1], [0, 0, 1, 1], [], []>} : vector<16x8xf32>, vector<8x32xf32>, vector<16x32xf32> -> vector<16x32xf32>
    %207 = arith.addf %185, %206 : vector<16x32xf32>
    %c0_79 = arith.constant 0 : index
    %c0_80 = arith.constant 0 : index
    %208 = vector.load %arg15[%c0_79, %c0_80] : memref<32x64xf32, #tpu.memory_space<vmem>>, vector<32x64xf32>
    %cst_81 = arith.constant dense<0.000000e+00> : vector<16x64xf32>
    %209 = tpu.matmul %207, %208, %cst_81 {dimension_numbers = #tpu.dot_dimension_numbers<[1], [0], [0], [1], [0, 0, 1, 1], [], []>} : vector<16x32xf32>, vector<32x64xf32>, vector<16x64xf32> -> vector<16x64xf32>
    %c0_82 = arith.constant 0 : index
    %c0_83 = arith.constant 0 : index
    %210 = vector.load %arg16[%c0_82, %c0_83] : memref<1x64xf32, #tpu.memory_space<vmem>>, vector<1x64xf32>
    %211 = vector.broadcast %210 : vector<1x64xf32> to vector<16x64xf32>
    %212 = arith.addf %209, %211 : vector<16x64xf32>
    %cst_84 = arith.constant 0.000000e+00 : f32
    %213 = vector.broadcast %cst_84 : f32 to vector<16x64xf32>
    %214 = arith.maximumf %212, %213 : vector<16x64xf32>
    %c0_85 = arith.constant 0 : index
    %c0_86 = arith.constant 0 : index
    %215 = vector.load %arg17[%c0_85, %c0_86] : memref<64x32xf32, #tpu.memory_space<vmem>>, vector<64x32xf32>
    %cst_87 = arith.constant dense<0.000000e+00> : vector<16x32xf32>
    %216 = tpu.matmul %214, %215, %cst_87 {dimension_numbers = #tpu.dot_dimension_numbers<[1], [0], [0], [1], [0, 0, 1, 1], [], []>} : vector<16x64xf32>, vector<64x32xf32>, vector<16x32xf32> -> vector<16x32xf32>
    %c0_88 = arith.constant 0 : index
    %c0_89 = arith.constant 0 : index
    %217 = vector.load %arg18[%c0_88, %c0_89] : memref<1x32xf32, #tpu.memory_space<vmem>>, vector<1x32xf32>
    %218 = vector.broadcast %217 : vector<1x32xf32> to vector<16x32xf32>
    %219 = arith.addf %216, %218 : vector<16x32xf32>
    %c0_90 = arith.constant 0 : index
    %c0_91 = arith.constant 0 : index
    %220 = vector.load %arg2[%c0_90, %c0_91] : memref<2x16xf32, #tpu.memory_space<vmem>>, vector<2x16xf32>
    %cst_92 = arith.constant dense<0.000000e+00> : vector<2x32xf32>
    %221 = tpu.matmul %220, %219, %cst_92 {dimension_numbers = #tpu.dot_dimension_numbers<[1], [0], [0], [1], [0, 0, 1, 1], [], []>} : vector<2x16xf32>, vector<16x32xf32>, vector<2x32xf32> -> vector<2x32xf32>
    %c0_93 = arith.constant 0 : index
    %c0_94 = arith.constant 0 : index
    %222 = vector.load %arg19[%c0_93, %c0_94] : memref<32x96xf32, #tpu.memory_space<vmem>>, vector<32x96xf32>
    %cst_95 = arith.constant dense<0.000000e+00> : vector<2x96xf32>
    %223 = tpu.matmul %221, %222, %cst_95 {dimension_numbers = #tpu.dot_dimension_numbers<[1], [0], [0], [1], [0, 0, 1, 1], [], []>} : vector<2x32xf32>, vector<32x96xf32>, vector<2x96xf32> -> vector<2x96xf32>
    %c0_96 = arith.constant 0 : index
    %c0_97 = arith.constant 0 : index
    %224 = vector.load %arg20[%c0_96, %c0_97] : memref<1x96xf32, #tpu.memory_space<vmem>>, vector<1x96xf32>
    %225 = vector.broadcast %224 : vector<1x96xf32> to vector<2x96xf32>
    %226 = arith.addf %223, %225 : vector<2x96xf32>
    %c0_98 = arith.constant 0 : index
    %c0_99 = arith.constant 0 : index
    %227 = vector.load %arg21[%c0_98, %c0_99] : memref<32x32xf32, #tpu.memory_space<vmem>>, vector<32x32xf32>
    %c0_100 = arith.constant 0 : index
    %c0_101 = arith.constant 0 : index
    %228 = vector.load %arg22[%c0_100, %c0_101] : memref<1x32xf32, #tpu.memory_space<vmem>>, vector<1x32xf32>
    %229 = vector.shape_cast %228 : vector<1x32xf32> to vector<1x32xf32>
    %230 = vector.broadcast %229 : vector<1x32xf32> to vector<2x32xf32>
    %231 = vector.extract_strided_slice %226 {offsets = [0, 0], sizes = [2, 8], strides = [1, 1]} : vector<2x96xf32> to vector<2x8xf32>
    %232 = vector.extract_strided_slice %226 {offsets = [0, 32], sizes = [2, 8], strides = [1, 1]} : vector<2x96xf32> to vector<2x8xf32>
    %233 = vector.extract_strided_slice %226 {offsets = [0, 64], sizes = [2, 8], strides = [1, 1]} : vector<2x96xf32> to vector<2x8xf32>
    %234 = tpu.transpose %232, [1, 0] : vector<2x8xf32> -> vector<8x2xf32>
    %cst_102 = arith.constant dense<0.000000e+00> : vector<2x2xf32>
    %235 = tpu.matmul %231, %234, %cst_102 {dimension_numbers = #tpu.dot_dimension_numbers<[1], [0], [0], [1], [0, 0, 1, 1], [], []>} : vector<2x8xf32>, vector<8x2xf32>, vector<2x2xf32> -> vector<2x2xf32>
    %cst_103 = arith.constant 0.353553385 : f32
    %236 = vector.broadcast %cst_103 : f32 to vector<2x2xf32>
    %237 = arith.mulf %235, %236 : vector<2x2xf32>
    %cst_104 = arith.constant dense<0xFF800000> : vector<2xf32>
    %238 = vector.multi_reduction <maximumf>, %237, %cst_104 [1] : vector<2x2xf32> to vector<2xf32>
    %239 = vector.shape_cast %238 : vector<2xf32> to vector<2x1xf32>
    %240 = vector.broadcast %239 : vector<2x1xf32> to vector<2x2xf32>
    %241 = arith.subf %237, %240 : vector<2x2xf32>
    %242 = math.exp %241 : vector<2x2xf32>
    %cst_105 = arith.constant dense<0.000000e+00> : vector<2xf32>
    %243 = vector.multi_reduction <add>, %242, %cst_105 [1] : vector<2x2xf32> to vector<2xf32>
    %244 = vector.shape_cast %243 : vector<2xf32> to vector<2x1xf32>
    %245 = tpu.reciprocal %244 {approx = true} : vector<2x1xf32> -> vector<2x1xf32>
    %246 = vector.broadcast %245 : vector<2x1xf32> to vector<2x2xf32>
    %247 = arith.mulf %242, %246 : vector<2x2xf32>
    %cst_106 = arith.constant dense<0.000000e+00> : vector<2x8xf32>
    %248 = tpu.matmul %247, %233, %cst_106 {dimension_numbers = #tpu.dot_dimension_numbers<[1], [0], [0], [1], [0, 0, 1, 1], [], []>} : vector<2x2xf32>, vector<2x8xf32>, vector<2x8xf32> -> vector<2x8xf32>
    %249 = vector.extract_strided_slice %227 {offsets = [0, 0], sizes = [8, 32], strides = [1, 1]} : vector<32x32xf32> to vector<8x32xf32>
    %cst_107 = arith.constant dense<0.000000e+00> : vector<2x32xf32>
    %250 = tpu.matmul %248, %249, %cst_107 {dimension_numbers = #tpu.dot_dimension_numbers<[1], [0], [0], [1], [0, 0, 1, 1], [], []>} : vector<2x8xf32>, vector<8x32xf32>, vector<2x32xf32> -> vector<2x32xf32>
    %251 = arith.addf %230, %250 : vector<2x32xf32>
    %252 = vector.extract_strided_slice %226 {offsets = [0, 8], sizes = [2, 8], strides = [1, 1]} : vector<2x96xf32> to vector<2x8xf32>
    %253 = vector.extract_strided_slice %226 {offsets = [0, 40], sizes = [2, 8], strides = [1, 1]} : vector<2x96xf32> to vector<2x8xf32>
    %254 = vector.extract_strided_slice %226 {offsets = [0, 72], sizes = [2, 8], strides = [1, 1]} : vector<2x96xf32> to vector<2x8xf32>
    %255 = tpu.transpose %253, [1, 0] : vector<2x8xf32> -> vector<8x2xf32>
    %cst_108 = arith.constant dense<0.000000e+00> : vector<2x2xf32>
    %256 = tpu.matmul %252, %255, %cst_108 {dimension_numbers = #tpu.dot_dimension_numbers<[1], [0], [0], [1], [0, 0, 1, 1], [], []>} : vector<2x8xf32>, vector<8x2xf32>, vector<2x2xf32> -> vector<2x2xf32>
    %cst_109 = arith.constant 0.353553385 : f32
    %257 = vector.broadcast %cst_109 : f32 to vector<2x2xf32>
    %258 = arith.mulf %256, %257 : vector<2x2xf32>
    %cst_110 = arith.constant dense<0xFF800000> : vector<2xf32>
    %259 = vector.multi_reduction <maximumf>, %258, %cst_110 [1] : vector<2x2xf32> to vector<2xf32>
    %260 = vector.shape_cast %259 : vector<2xf32> to vector<2x1xf32>
    %261 = vector.broadcast %260 : vector<2x1xf32> to vector<2x2xf32>
    %262 = arith.subf %258, %261 : vector<2x2xf32>
    %263 = math.exp %262 : vector<2x2xf32>
    %cst_111 = arith.constant dense<0.000000e+00> : vector<2xf32>
    %264 = vector.multi_reduction <add>, %263, %cst_111 [1] : vector<2x2xf32> to vector<2xf32>
    %265 = vector.shape_cast %264 : vector<2xf32> to vector<2x1xf32>
    %266 = tpu.reciprocal %265 {approx = true} : vector<2x1xf32> -> vector<2x1xf32>
    %267 = vector.broadcast %266 : vector<2x1xf32> to vector<2x2xf32>
    %268 = arith.mulf %263, %267 : vector<2x2xf32>
    %cst_112 = arith.constant dense<0.000000e+00> : vector<2x8xf32>
    %269 = tpu.matmul %268, %254, %cst_112 {dimension_numbers = #tpu.dot_dimension_numbers<[1], [0], [0], [1], [0, 0, 1, 1], [], []>} : vector<2x2xf32>, vector<2x8xf32>, vector<2x8xf32> -> vector<2x8xf32>
    %270 = vector.extract_strided_slice %227 {offsets = [8, 0], sizes = [8, 32], strides = [1, 1]} : vector<32x32xf32> to vector<8x32xf32>
    %cst_113 = arith.constant dense<0.000000e+00> : vector<2x32xf32>
    %271 = tpu.matmul %269, %270, %cst_113 {dimension_numbers = #tpu.dot_dimension_numbers<[1], [0], [0], [1], [0, 0, 1, 1], [], []>} : vector<2x8xf32>, vector<8x32xf32>, vector<2x32xf32> -> vector<2x32xf32>
    %272 = arith.addf %251, %271 : vector<2x32xf32>
    %273 = vector.extract_strided_slice %226 {offsets = [0, 16], sizes = [2, 8], strides = [1, 1]} : vector<2x96xf32> to vector<2x8xf32>
    %274 = vector.extract_strided_slice %226 {offsets = [0, 48], sizes = [2, 8], strides = [1, 1]} : vector<2x96xf32> to vector<2x8xf32>
    %275 = vector.extract_strided_slice %226 {offsets = [0, 80], sizes = [2, 8], strides = [1, 1]} : vector<2x96xf32> to vector<2x8xf32>
    %276 = tpu.transpose %274, [1, 0] : vector<2x8xf32> -> vector<8x2xf32>
    %cst_114 = arith.constant dense<0.000000e+00> : vector<2x2xf32>
    %277 = tpu.matmul %273, %276, %cst_114 {dimension_numbers = #tpu.dot_dimension_numbers<[1], [0], [0], [1], [0, 0, 1, 1], [], []>} : vector<2x8xf32>, vector<8x2xf32>, vector<2x2xf32> -> vector<2x2xf32>
    %cst_115 = arith.constant 0.353553385 : f32
    %278 = vector.broadcast %cst_115 : f32 to vector<2x2xf32>
    %279 = arith.mulf %277, %278 : vector<2x2xf32>
    %cst_116 = arith.constant dense<0xFF800000> : vector<2xf32>
    %280 = vector.multi_reduction <maximumf>, %279, %cst_116 [1] : vector<2x2xf32> to vector<2xf32>
    %281 = vector.shape_cast %280 : vector<2xf32> to vector<2x1xf32>
    %282 = vector.broadcast %281 : vector<2x1xf32> to vector<2x2xf32>
    %283 = arith.subf %279, %282 : vector<2x2xf32>
    %284 = math.exp %283 : vector<2x2xf32>
    %cst_117 = arith.constant dense<0.000000e+00> : vector<2xf32>
    %285 = vector.multi_reduction <add>, %284, %cst_117 [1] : vector<2x2xf32> to vector<2xf32>
    %286 = vector.shape_cast %285 : vector<2xf32> to vector<2x1xf32>
    %287 = tpu.reciprocal %286 {approx = true} : vector<2x1xf32> -> vector<2x1xf32>
    %288 = vector.broadcast %287 : vector<2x1xf32> to vector<2x2xf32>
    %289 = arith.mulf %284, %288 : vector<2x2xf32>
    %cst_118 = arith.constant dense<0.000000e+00> : vector<2x8xf32>
    %290 = tpu.matmul %289, %275, %cst_118 {dimension_numbers = #tpu.dot_dimension_numbers<[1], [0], [0], [1], [0, 0, 1, 1], [], []>} : vector<2x2xf32>, vector<2x8xf32>, vector<2x8xf32> -> vector<2x8xf32>
    %291 = vector.extract_strided_slice %227 {offsets = [16, 0], sizes = [8, 32], strides = [1, 1]} : vector<32x32xf32> to vector<8x32xf32>
    %cst_119 = arith.constant dense<0.000000e+00> : vector<2x32xf32>
    %292 = tpu.matmul %290, %291, %cst_119 {dimension_numbers = #tpu.dot_dimension_numbers<[1], [0], [0], [1], [0, 0, 1, 1], [], []>} : vector<2x8xf32>, vector<8x32xf32>, vector<2x32xf32> -> vector<2x32xf32>
    %293 = arith.addf %272, %292 : vector<2x32xf32>
    %294 = vector.extract_strided_slice %226 {offsets = [0, 24], sizes = [2, 8], strides = [1, 1]} : vector<2x96xf32> to vector<2x8xf32>
    %295 = vector.extract_strided_slice %226 {offsets = [0, 56], sizes = [2, 8], strides = [1, 1]} : vector<2x96xf32> to vector<2x8xf32>
    %296 = vector.extract_strided_slice %226 {offsets = [0, 88], sizes = [2, 8], strides = [1, 1]} : vector<2x96xf32> to vector<2x8xf32>
    %297 = tpu.transpose %295, [1, 0] : vector<2x8xf32> -> vector<8x2xf32>
    %cst_120 = arith.constant dense<0.000000e+00> : vector<2x2xf32>
    %298 = tpu.matmul %294, %297, %cst_120 {dimension_numbers = #tpu.dot_dimension_numbers<[1], [0], [0], [1], [0, 0, 1, 1], [], []>} : vector<2x8xf32>, vector<8x2xf32>, vector<2x2xf32> -> vector<2x2xf32>
    %cst_121 = arith.constant 0.353553385 : f32
    %299 = vector.broadcast %cst_121 : f32 to vector<2x2xf32>
    %300 = arith.mulf %298, %299 : vector<2x2xf32>
    %cst_122 = arith.constant dense<0xFF800000> : vector<2xf32>
    %301 = vector.multi_reduction <maximumf>, %300, %cst_122 [1] : vector<2x2xf32> to vector<2xf32>
    %302 = vector.shape_cast %301 : vector<2xf32> to vector<2x1xf32>
    %303 = vector.broadcast %302 : vector<2x1xf32> to vector<2x2xf32>
    %304 = arith.subf %300, %303 : vector<2x2xf32>
    %305 = math.exp %304 : vector<2x2xf32>
    %cst_123 = arith.constant dense<0.000000e+00> : vector<2xf32>
    %306 = vector.multi_reduction <add>, %305, %cst_123 [1] : vector<2x2xf32> to vector<2xf32>
    %307 = vector.shape_cast %306 : vector<2xf32> to vector<2x1xf32>
    %308 = tpu.reciprocal %307 {approx = true} : vector<2x1xf32> -> vector<2x1xf32>
    %309 = vector.broadcast %308 : vector<2x1xf32> to vector<2x2xf32>
    %310 = arith.mulf %305, %309 : vector<2x2xf32>
    %cst_124 = arith.constant dense<0.000000e+00> : vector<2x8xf32>
    %311 = tpu.matmul %310, %296, %cst_124 {dimension_numbers = #tpu.dot_dimension_numbers<[1], [0], [0], [1], [0, 0, 1, 1], [], []>} : vector<2x2xf32>, vector<2x8xf32>, vector<2x8xf32> -> vector<2x8xf32>
    %312 = vector.extract_strided_slice %227 {offsets = [24, 0], sizes = [8, 32], strides = [1, 1]} : vector<32x32xf32> to vector<8x32xf32>
    %cst_125 = arith.constant dense<0.000000e+00> : vector<2x32xf32>
    %313 = tpu.matmul %311, %312, %cst_125 {dimension_numbers = #tpu.dot_dimension_numbers<[1], [0], [0], [1], [0, 0, 1, 1], [], []>} : vector<2x8xf32>, vector<8x32xf32>, vector<2x32xf32> -> vector<2x32xf32>
    %314 = arith.addf %293, %313 : vector<2x32xf32>
    %c0_126 = arith.constant 0 : index
    %c0_127 = arith.constant 0 : index
    %315 = vector.load %arg23[%c0_126, %c0_127] : memref<32x64xf32, #tpu.memory_space<vmem>>, vector<32x64xf32>
    %cst_128 = arith.constant dense<0.000000e+00> : vector<2x64xf32>
    %316 = tpu.matmul %314, %315, %cst_128 {dimension_numbers = #tpu.dot_dimension_numbers<[1], [0], [0], [1], [0, 0, 1, 1], [], []>} : vector<2x32xf32>, vector<32x64xf32>, vector<2x64xf32> -> vector<2x64xf32>
    %c0_129 = arith.constant 0 : index
    %c0_130 = arith.constant 0 : index
    %317 = vector.load %arg24[%c0_129, %c0_130] : memref<1x64xf32, #tpu.memory_space<vmem>>, vector<1x64xf32>
    %318 = vector.broadcast %317 : vector<1x64xf32> to vector<2x64xf32>
    %319 = arith.addf %316, %318 : vector<2x64xf32>
    %cst_131 = arith.constant 0.000000e+00 : f32
    %320 = vector.broadcast %cst_131 : f32 to vector<2x64xf32>
    %321 = arith.maximumf %319, %320 : vector<2x64xf32>
    %c0_132 = arith.constant 0 : index
    %c0_133 = arith.constant 0 : index
    %322 = vector.load %arg25[%c0_132, %c0_133] : memref<64x32xf32, #tpu.memory_space<vmem>>, vector<64x32xf32>
    %cst_134 = arith.constant dense<0.000000e+00> : vector<2x32xf32>
    %323 = tpu.matmul %321, %322, %cst_134 {dimension_numbers = #tpu.dot_dimension_numbers<[1], [0], [0], [1], [0, 0, 1, 1], [], []>} : vector<2x64xf32>, vector<64x32xf32>, vector<2x32xf32> -> vector<2x32xf32>
    %c0_135 = arith.constant 0 : index
    %c0_136 = arith.constant 0 : index
    %324 = vector.load %arg26[%c0_135, %c0_136] : memref<1x32xf32, #tpu.memory_space<vmem>>, vector<1x32xf32>
    %325 = vector.broadcast %324 : vector<1x32xf32> to vector<2x32xf32>
    %326 = arith.addf %323, %325 : vector<2x32xf32>
    %cst_137 = arith.constant dense<0.000000e+00> : vector<32xf32>
    %327 = vector.multi_reduction <add>, %326, %cst_137 [0] : vector<2x32xf32> to vector<32xf32>
    %328 = vector.shape_cast %327 : vector<32xf32> to vector<1x32xf32>
    %cst_138 = arith.constant 2.000000e+00 : f32
    %329 = vector.broadcast %cst_138 : f32 to vector<1x32xf32>
    %330 = arith.divf %328, %329 : vector<1x32xf32>
    %c0_139 = arith.constant 0 : index
    %c0_140 = arith.constant 0 : index
    %331 = vector.load %arg27[%c0_139, %c0_140] : memref<1x32xf32, #tpu.memory_space<vmem>>, vector<1x32xf32>
    tpu.vector_store %arg27[%c0_139, %c0_140], %330 {strides = array<i32>} : memref<1x32xf32, #tpu.memory_space<vmem>>, vector<1x32xf32>,
    return
  }
}

</mosaic_0001>

<bundles_post_ra>
// kernel: tpu_custom_call.1
= control target key start
LH: loop header
LB: loop body
LE: loop exit
PB: predicated region body
PF: predicated region fallthrough
CT: control target
= control target key end

     0   :  { %s6211_s0 = inlined_call_operand.hbm [shape: f32[16,32], index: 0, kind: input, shape index: {}]   ;;  %s6212_s1 = inlined_call_operand.hbm [shape: f32[16,16], index: 1, kind: input, shape index: {}]   ;;  %s6213_s2 = inlined_call_operand.hbm [shape: f32[2,16], index: 2, kind: input, shape index: {}]   ;;  %s6214_s3 = inlined_call_operand.vmem [shape: f32[32,96], index: 3, kind: input, shape index: {}]   ;;  %s6215_s4 = inlined_call_operand.hbm [shape: f32[1,96], index: 4, kind: input, shape index: {}]   ;;  %s6216_s5 = inlined_call_operand.vmem [shape: f32[32,32], index: 5, kind: input, shape index: {}]   ;;  %s6217_s6 = inlined_call_operand.hbm [shape: f32[1,32], index: 6, kind: input, shape index: {}]   ;;  %s6218_s7 = inlined_call_operand.vmem [shape: f32[32,64], index: 7, kind: input, shape index: {}]   ;;  %s6219_s8 = inlined_call_operand.hbm [shape: f32[1,64], index: 8, kind: input, shape index: {}]   ;;  %s6220_s9 = inlined_call_operand.vmem [shape: f32[64,32], index: 9, kind: input, shape index: {}]   ;;  %s6221_s10 = inlined_call_operand.hbm [shape: f32[1,32], index: 10, kind: input, shape index: {}]   ;;  %s6222_s11 = inlined_call_operand.vmem [shape: f32[32,96], index: 11, kind: input, shape index: {}]   ;;  %s6223_s12 = inlined_call_operand.hbm [shape: f32[1,96], index: 12, kind: input, shape index: {}]   ;;  %s6224_s13 = inlined_call_operand.vmem [shape: f32[32,32], index: 13, kind: input, shape index: {}]   ;;  %s6225_s14 = inlined_call_operand.hbm [shape: f32[1,32], index: 14, kind: input, shape index: {}]   ;;  %s6226_s15 = inlined_call_operand.vmem [shape: f32[32,64], index: 15, kind: input, shape index: {}]   ;;  %s6227_s16 = inlined_call_operand.hbm [shape: f32[1,64], index: 16, kind: input, shape index: {}]   ;;  %s6228_s17 = inlined_call_operand.vmem [shape: f32[64,32], index: 17, kind: input, shape index: {}]   ;;  %s6229_s18 = inlined_call_operand.hbm [shape: f32[1,32], index: 18, kind: input, shape index: {}]   ;;  %s6230_s19 = inlined_call_operand.vmem [shape: f32[32,96], index: 19, kind: input, shape index: {}]   ;;  %s6231_s20 = inlined_call_operand.vmem [shape: f32[1,96], index: 20, kind: input, shape index: {}]   ;;  %s6232_s21 = inlined_call_operand.vmem [shape: f32[32,32], index: 21, kind: input, shape index: {}]   ;;  %s6233_s22 = inlined_call_operand.vmem [shape: f32[1,32], index: 22, kind: input, shape index: {}]   ;;  %s6234_s23 = inlined_call_operand.vmem [shape: f32[32,64], index: 23, kind: input, shape index: {}]   ;;  %s6235_s24 = inlined_call_operand.vmem [shape: f32[1,64], index: 24, kind: input, shape index: {}]   ;;  %s6236_s25 = inlined_call_operand.vmem [shape: f32[64,32], index: 25, kind: input, shape index: {}]   ;;  %s6237_s26 = inlined_call_operand.vmem [shape: f32[1,32], index: 26, kind: input, shape index: {}]   ;;  %s6238_s27 = inlined_call_operand.hbm [shape: f32[1,32], index: 27, kind: output, shape index: {}]  }
   0x1   :  { %6246 = sst [smem:[#allocation28_spill]] %s6211_s0 }
   0x2   :  { %6247 = sst [smem:[#allocation29_spill]] %s6212_s1 }
   0x3   :  { %6248 = sst [smem:[#allocation30_spill]] %s6213_s2 }
   0x4   :  { %6249 = sst [smem:[#allocation31_spill]] %s6214_s3 }
   0x5   :  { %6250 = sst [smem:[#allocation32_spill]] %s6215_s4 }
   0x6   :  { %6251 = sst [smem:[#allocation33_spill]] %s6216_s5 }
   0x7   :  { %6252 = sst [smem:[#allocation34_spill]] %s6217_s6 }
   0x8   :  { %6253 = sst [smem:[#allocation35_spill]] %s6218_s7 }
   0x9   :  { %6254 = sst [smem:[#allocation36_spill]] %s6219_s8 }
   0xa   :  { %6255 = sst [smem:[#allocation37_spill]] %s6220_s9 }
   0xb   :  { %6256 = sst [smem:[#allocation38_spill]] %s6221_s10 }
   0xc   :  { %6257 = sst [smem:[#allocation39_spill]] %s6222_s11 }
   0xd   :  { %6258 = sst [smem:[#allocation40_spill]] %s6238_s27 }
   0xe   :  { %32 = vsyncpa [#allocation3], 0 }
   0xf   :  { %33 = vsyncpa [#allocation6], 0 }
  0x10   :  { %34 = vsyncpa [#allocation9], 0 }
  0x11   :  { %35 = vsyncpa [#allocation12], 0 }
  0x12   :  { %36 = vsyncpa [#allocation15], 0 }
  0x13   :  { %37 = vsyncpa [#allocation18], 0 }
  0x14   :  { %38 = vsyncpa [#allocation4], 0  ;;  %s5439_s7 = smov [#allocation5]   ;;  %s5440_s8 = smov [#allocation8]  }
  0x15   :  { %s56_s4 = sshll.u32 %s5439_s7, 4  ;;  %s81_s30 = sshll.u32 %s5440_s8, 4  ;;  %s57_s4 = int_to_ptr.vmem [resolvable:$true] %s56_s4  ;;  %s82_s30 = int_to_ptr.vmem [resolvable:$true] %s81_s30 }
  0x16   :  { %s5193_s9 = scalar_lea.vmem %s57_s4, 256  ;;  %p5198_p1 = scmp.lt.s32.totalorder %s57_s4, %s57_s4 }
  0x17   :  { %p5194_p0 = scmp.ne.s32.totalorder %s57_s4, %s5193_s9  ;;  %p5199_p2 = scmp.lt.s32.totalorder %s5193_s9, %s5193_s9 }
  0x19   :  { %p5200_p3 = por %p5199_p2, %p5198_p1 }
  0x1b   :  { %p5201_p4 = pnand %p5200_p3, %p5194_p0 }
  0x1d   :  { %5204 = shalt.err (!%p5201_p4)
}
  0x1e   :  { %s5441_s5 = smov 128   ;;  %s5442_s28 = smov 8  }
  0x1f   :  { %s6259_s29 = sld [smem:[#allocation29_spill]]  ;;  %s5213_s1 = scalar_lea.vmem %s82_s30, 16 }
  0x20   :  { %p5214_p5 = scmp.ne.s32.totalorder %s82_s30, %s5213_s1  ;;  %s5217_s6 = scalar_lea.vmem %s82_s30, 32 }
  0x21   :  { %p5218_p6 = scmp.lt.s32.totalorder %s82_s30, %s82_s30  ;;  %p5219_p7 = scmp.lt.s32.totalorder %s5217_s6, %s5213_s1 }
  0x23   :  { %p5220_p8 = por %p5219_p7, %p5218_p6 }
  0x25   :  { %62 = dma.hbm_to_vmem [thread:$0]  %s6259_s29, 256, %s57_s4, [#allocation6], %s5441_s5, %s5441_s5, %s5442_s28  }
  0x26   :  { %p5221_p9 = pnand %p5220_p8, %p5214_p5 }
  0x28   :  { %5224 = shalt.err (!%p5221_p9)
}
  0x29   :  { %s6260_s3 = sld [smem:[#allocation32_spill]]  ;;  %s5443_s7 = smov [#allocation11]  }
  0x2a   :  { %s105_s8 = sshll.u32 %s5443_s7, 4  ;;  %s5444_s9 = smov [#allocation14]   ;;  %s106_s8 = int_to_ptr.vmem [resolvable:$true] %s105_s8 }
  0x2b   :  { %s129_s27 = sshll.u32 %s5444_s9, 4  ;;  %s5233_s0 = scalar_lea.vmem %s106_s8, 16  ;;  %s130_s27 = int_to_ptr.vmem [resolvable:$true] %s129_s27 }
  0x2c   :  { %p5234_p10 = scmp.ne.s32.totalorder %s106_s8, %s5233_s0  ;;  %s5237_s4 = scalar_lea.vmem %s106_s8, 32 }
  0x2d   :  { %p5238_p11 = scmp.lt.s32.totalorder %s106_s8, %s106_s8  ;;  %p5239_p12 = scmp.lt.s32.totalorder %s5237_s4, %s5233_s0 }
  0x2f   :  { %84 = dma.hbm_to_vmem [thread:$0]  %s6260_s3, 16, %s82_s30, [#allocation9]  }
  0x30   :  { %p5240_p13 = por %p5239_p12, %p5238_p11 }
  0x32   :  { %p5241_p0 = pnand %p5240_p13, %p5234_p10 }
  0x34   :  { %5244 = shalt.err (!%p5241_p0)
}
  0x35   :  { %s6261_s1 = sld [smem:[#allocation36_spill]]  ;;  %s5253_s6 = scalar_lea.vmem %s130_s27, 16 }
  0x36   :  { %p5254_p1 = scmp.ne.s32.totalorder %s130_s27, %s5253_s6  ;;  %s5257_s30 = scalar_lea.vmem %s130_s27, 32 }
  0x37   :  { %p5258_p2 = scmp.lt.s32.totalorder %s130_s27, %s130_s27  ;;  %p5259_p3 = scmp.lt.s32.totalorder %s5257_s30, %s5253_s6 }
  0x39   :  { %p5260_p4 = por %p5259_p3, %p5258_p2 }
  0x3b   :  { %108 = dma.hbm_to_vmem [thread:$0]  %s6261_s1, 16, %s106_s8, [#allocation12]  }
  0x3c   :  { %p5261_p5 = pnand %p5260_p4, %p5254_p1 }
  0x3e   :  { %5264 = shalt.err (!%p5261_p5)
}
  0x3f   :  { %132 = dma.hbm_to_vmem [thread:$0]  %s6223_s12, 16, %s130_s27, [#allocation15]  }
  0x40   :  { %s5445_s3 = smov [#allocation17]   ;;  %s5446_s9 = smov [#allocation2]  }
  0x41   :  { %s153_s7 = sshll.u32 %s5445_s3, 4  ;;  %s44_s0 = sshll.u32 %s5446_s9, 4  ;;  %s154_s7 = int_to_ptr.vmem [resolvable:$true] %s153_s7  ;;  %s45_s0 = int_to_ptr.vmem [resolvable:$true] %s44_s0 }
  0x42   :  { %s5273_s4 = scalar_lea.vmem %s154_s7, 16  ;;  %s5277_s8 = scalar_lea.vmem %s154_s7, 32 }
  0x43   :  { %p5274_p6 = scmp.ne.s32.totalorder %s154_s7, %s5273_s4  ;;  %p5278_p7 = scmp.lt.s32.totalorder %s154_s7, %s154_s7 }
  0x44   :  { %p5279_p8 = scmp.lt.s32.totalorder %s5277_s8, %s5273_s4 }
  0x46   :  { %p5280_p9 = por %p5279_p8, %p5278_p7 }
  0x48   :  { %p5281_p10 = pnand %p5280_p9, %p5274_p6 }
  0x4a   :  { %5284 = shalt.err (!%p5281_p10)
}
  0x4b   :  { %156 = dma.hbm_to_vmem [thread:$0]  %s6227_s16, 16, %s154_s7, [#allocation18]  }
  0x4c   :  { %s5293_s1 = scalar_lea.vmem %s45_s0, 256  ;;  %p5298_p12 = scmp.lt.s32.totalorder %s45_s0, %s45_s0 }
  0x4d   :  { %p5294_p11 = scmp.ne.s32.totalorder %s45_s0, %s5293_s1  ;;  %p5299_p13 = scmp.lt.s32.totalorder %s5293_s1, %s5293_s1 }
  0x4f   :  { %p5300_p0 = por %p5299_p13, %p5298_p12 }
  0x51   :  { %p5301_p1 = pnand %p5300_p0, %p5294_p11 }
  0x53   :  { %5304 = shalt.err (!%p5301_p1)
}
  0x54   :  { %s6262_s6 = sld [smem:[#allocation28_spill]]  ;;  %s5447_s30 = smov [#allocation7]  }
  0x55   :  { %s69_s11 = sshll.u32 %s5447_s30, 4  ;;  %s5448_s2 = smov [#allocation10]   ;;  %s70_s11 = int_to_ptr.vmem [resolvable:$true] %s69_s11 }
  0x56   :  { %s93_s3 = sshll.u32 %s5448_s2, 4  ;;  %s5313_s16 = scalar_lea.vmem %s70_s11, 32  ;;  %s94_s3 = int_to_ptr.vmem [resolvable:$true] %s93_s3 }
  0x57   :  { %p5314_p2 = scmp.ne.s32.totalorder %s70_s11, %s5313_s16  ;;  %p5318_p3 = scmp.lt.s32.totalorder %s70_s11, %s70_s11 }
  0x58   :  { %p5319_p4 = scmp.lt.s32.totalorder %s5313_s16, %s5313_s16 }
  0x5a   :  { %50 = dma.hbm_to_vmem [thread:$0]  %s6262_s6, 256, %s45_s0, [#allocation3], %s5441_s5, %s5441_s5, %s5442_s28  }
  0x5b   :  { %p5320_p5 = por %p5319_p4, %p5318_p3 }
  0x5d   :  { %p5321_p6 = pnand %p5320_p5, %p5314_p2 }
  0x5f   :  { %5324 = shalt.err (!%p5321_p6)
}
  0x60   :  { %s6263_s4 = sld [smem:[#allocation30_spill]]  ;;  %s5333_s8 = scalar_lea.vmem %s94_s3, 16 }
  0x61   :  { %p5334_p7 = scmp.ne.s32.totalorder %s94_s3, %s5333_s8  ;;  %s5337_s5 = scalar_lea.vmem %s94_s3, 32 }
  0x62   :  { %p5338_p8 = scmp.lt.s32.totalorder %s94_s3, %s94_s3  ;;  %p5339_p9 = scmp.lt.s32.totalorder %s5337_s5, %s5333_s8 }
  0x64   :  { %p5340_p10 = por %p5339_p9, %p5338_p8 }
  0x66   :  { %72 = dma.hbm_to_vmem [thread:$0]  %s6263_s4, 32, %s70_s11, [#allocation6]  }
  0x67   :  { %p5341_p11 = pnand %p5340_p10, %p5334_p7 }
  0x69   :  { %5344 = shalt.err (!%p5341_p11)
}
  0x6a   :  { %s6264_s10 = sld [smem:[#allocation34_spill]]  ;;  %s5449_s29 = smov [#allocation13]  }
  0x6b   :  { %s117_s1 = sshll.u32 %s5449_s29, 4  ;;  %s5450_s12 = smov [#allocation16]   ;;  %s118_s1 = int_to_ptr.vmem [resolvable:$true] %s117_s1 }
  0x6c   :  { %s141_s27 = sshll.u32 %s5450_s12, 4  ;;  %s5353_s6 = scalar_lea.vmem %s118_s1, 16  ;;  %s142_s27 = int_to_ptr.vmem [resolvable:$true] %s141_s27 }
  0x6d   :  { %p5354_p12 = scmp.ne.s32.totalorder %s118_s1, %s5353_s6  ;;  %s5357_s30 = scalar_lea.vmem %s118_s1, 32 }
  0x6e   :  { %p5358_p13 = scmp.lt.s32.totalorder %s118_s1, %s118_s1  ;;  %p5359_p0 = scmp.lt.s32.totalorder %s5357_s30, %s5353_s6 }
  0x70   :  { %96 = dma.hbm_to_vmem [thread:$0]  %s6264_s10, 16, %s94_s3, [#allocation9]  }
  0x71   :  { %p5360_p1 = por %p5359_p0, %p5358_p13 }
  0x73   :  { %p5361_p2 = pnand %p5360_p1, %p5354_p12 }
  0x75   :  { %5364 = shalt.err (!%p5361_p2)
}
  0x76   :  { %s6265_s16 = sld [smem:[#allocation38_spill]]  ;;  %s5373_s7 = scalar_lea.vmem %s142_s27, 16 }
  0x77   :  { %p5374_p3 = scmp.ne.s32.totalorder %s142_s27, %s5373_s7  ;;  %s5377_s3 = scalar_lea.vmem %s142_s27, 32 }
  0x78   :  { %p5378_p4 = scmp.lt.s32.totalorder %s142_s27, %s142_s27  ;;  %p5379_p5 = scmp.lt.s32.totalorder %s5377_s3, %s5373_s7 }
  0x7a   :  { %p5380_p6 = por %p5379_p5, %p5378_p4 }
  0x7c   :  { %120 = dma.hbm_to_vmem [thread:$0]  %s6265_s16, 16, %s118_s1, [#allocation12]  }
  0x7d   :  { %p5381_p7 = pnand %p5380_p6, %p5374_p3 }
  0x7f   :  { %5384 = shalt.err (!%p5381_p7)
}
  0x80   :  { %144 = dma.hbm_to_vmem [thread:$0]  %s6225_s14, 16, %s142_s27, [#allocation15]  }
  0x81   :  { %s5451_s8 = smov [#allocation19]  }
  0x82   :  { %s165_s5 = sshll.u32 %s5451_s8, 4  ;;  %s166_s5 = int_to_ptr.vmem [resolvable:$true] %s165_s5 }
  0x83   :  { %s5393_s28 = scalar_lea.vmem %s166_s5, 16  ;;  %s5397_s0 = scalar_lea.vmem %s166_s5, 32 }
  0x84   :  { %p5394_p8 = scmp.ne.s32.totalorder %s166_s5, %s5393_s28  ;;  %p5398_p9 = scmp.lt.s32.totalorder %s166_s5, %s166_s5 }
  0x85   :  { %p5399_p10 = scmp.lt.s32.totalorder %s5397_s0, %s5393_s28 }
  0x87   :  { %p5400_p11 = por %p5399_p10, %p5398_p9 }
  0x89   :  { %p5401_p12 = pnand %p5400_p11, %p5394_p8 }
  0x8b   :  { %5404 = shalt.err (!%p5401_p12)
}
  0x8c   :  { %168 = dma.hbm_to_vmem [thread:$0]  %s6229_s18, 16, %s166_s5, [#allocation18]  }
  0x8d   :  { %5425 = dma.done.wait [#allocation3], 256  }
  0x8e   :  { %5426 = vsyncadd [#allocation3], 4294967040 }
  0x8f   :  { %5427 = dma.done.wait [#allocation6], 288  }
  0x90   :  { %5428 = vsyncadd [#allocation6], 4294967008 }
  0x91   :  { %5429 = dma.done.wait [#allocation9], 32  }
  0x92   :  { %5430 = vsyncadd [#allocation9], 4294967264 }
  0x93   :  { %5431 = dma.done.wait [#allocation12], 32  }
  0x94   :  { %5432 = vsyncadd [#allocation12], 4294967264 }
  0x95   :  { %5433 = dma.done.wait [#allocation15], 32  }
  0x96   :  { %5434 = vsyncadd [#allocation15], 4294967264 }
  0x97   :  { %5435 = dma.done.wait [#allocation18], 32  }
  0x98   :  { %5436 = vsyncadd [#allocation18], 4294967264  ;;  %vm233_vm0 = vcmask 261120   ;;  %s6266_s12 = sld [smem:[#allocation31_spill]]  ;;  %v218_v2 = vld [vmem:[#allocation2] sm:$0xff]  ;;  %v219_v5 = vld [vmem:[#allocation2 + $0x8] sm:$0xff] }
  0x99   :  { %4742 = vmatprep.mubr.msk.f32.mxu1 %vm233_vm0, %v218_v2  ;;  %v4444_v6 = vld [vmem:[#allocation8] ss:$0 sm:$0xff]  ;;  %vm332_vm1 = vcmask 64512   ;;  %s5452_s16 = smov 96   ;;  %v5675_v15 = vld [vmem:[#allocation5] sm:$0xff]  ;;  %v5677_v18 = vld [vmem:[#allocation5 + $0x8] sm:$0xff] }
  0x9a   :  { %vm420_vm2 = vcmask 130048   ;;  %s5453_s7 = smov 64   ;;  %s5454_s3 = smov 120   ;;  %vm1583_vm3 = vcmask 523264   ;;  %vm5464_vm4 = vmmov 0   ;;  %vm3351_vm5 = vcmask 9216  }
  0x9b   :  { %s5455_s9 = smov 88   ;;  %s5456_s4 = smov 80   ;;  %vm3369_vm6 = vcmask 1041408   ;;  %vm3365_vm7 = vcmask 15360   ;;  %vm4412_vm8 = vcmask 254976   ;;  %vm4422_vm9 = vcmask 253952  }
  0x9c   :  { %s5457_s8 = smov 112   ;;  %s6267_s0 = sld [smem:[#allocation33_spill]] }
  0x9d   :  { %s5458_s10 = smov 56   ;;  %s5459_s29 = smov 72  }
  0x9e   :  { %v225_v0 = vld [vmem:[%s6266_s12 + $0x18] sm:$0xff]  ;;  %v224_v1 = vld [vmem:[%s6266_s12 + $0x10] sm:$0xff]  ;;  %v223_v3 = vld [vmem:[%s6266_s12 + $0x8] sm:$0xff]  ;;  %s5460_s14 = smov 104   ;;  %s5461_s1 = smov 48  }
  0x9f   :  { %4734 = vmatprep.subr.mxu1 %v225_v0  ;;  %v222_v4 = vld [vmem:[%s6266_s12] sm:$0xff]  ;;  %s6244_s30 = smov 40   ;;  %s6268_s12 = sld [smem:[#allocation35_spill]] }
  0xa0   :  { %4735 = vmatpush3.msra.mxu1 %v225_v0  ;;  %s6270_s5 = sld [smem:[#allocation39_spill]]  ;;  %s6271_s27 = smov 40  }
  0xa1   :  { %4736 = vmatprep.subr.mxu1 %v224_v1 }
  0xa2   :  { %4737 = vmatpush3.msra.mxu1 %v224_v1  ;;  %v315_v49 = vld [vmem:[%s6267_s0] sm:$0xff] }
  0xa3   :  { %4738 = vmatprep.subr.mxu1 %v223_v3 }
  0xa4   :  { %4739 = vmatpush3.msra.mxu1 %v223_v3 }
  0xa5   :  { %4740 = vmatprep.subr.mxu1 %v222_v4 }
  0xa6   :  { %4741 = vmatpush3.msra.mxu1 %v222_v4 }
  0xa7   :  { %4743 = vmatmul.mubr.msk.f32.vlgmr.msra.gmra.mxu1 %vm233_vm0, %v219_v5 }
 0x167   :  { %v4744_v7 = vpop.f32.mrf.mxu1 }
 0x168   :  { %v5659_v8 = vadd.f32 %v4744_v7, %v4444_v6 }
 0x169   :  { %v306_v9 = vpop.f32.mrf.mxu1 }
 0x16a   :  { %v5661_v10 = vadd.f32 %v4444_v6, %v306_v9  ;;  %330 = vrot.lane.b32.xlu0 %v5659_v8, %s5452_s16 }
 0x16c   :  { %4749 = vmatprep.mubr.msk.f32.mxu1 %vm332_vm1, %v5661_v10 }
 0x16e   :  { %328 = vrot.lane.b32.xlu0 %v5661_v10, %s5452_s16 }
 0x1dc   :  { %v331_v11 = vpop.permute.xlu0 %330 }
 0x1dd   :  { %4745 = vmatprep.subr.msk.mxu1 %vm332_vm1, %v331_v11 }
 0x1de   :  { %4746 = vmatpush3.xpose.msk.msra.mxu1 %vm332_vm1, %v331_v11 }
 0x1e0   :  { %v329_v12 = vpop.permute.xlu0 %328 }
 0x1e1   :  { %4747 = vmatprep.subr.msk.mxu1 %vm332_vm1, %v329_v12 }
 0x1e2   :  { %4748 = vmatpush3.xpose.msk.msra.mxu1 %vm332_vm1, %v329_v12 }
 0x1e3   :  { %4759 = vmatprep.subr.mxu1 %v315_v49 }
 0x1e5   :  { %4750 = vmatmul.mubr.msk.f32.vlgmr.msra.gmra.mxu1 %vm332_vm1, %v5659_v8 }
 0x1e6   :  { %4760 = vmatpush3.msra.mxu1 %v315_v49 }
 0x2a5   :  { %v4751_v13 = vpop.f32.mrf.mxu1 }
 0x2a6   :  { %v417_v16 = vmul.f32 0.35355338, %v4751_v13 }
 0x2a7   :  { %v407_v14 = vpop.f32.mrf.mxu1 }
 0x2a8   :  { %v416_v17 = vmul.f32 0.35355338, %v407_v14  ;;  %v419_v21 = vadd.f32 %v417_v16, %v5677_v18 }
 0x2aa   :  { %v418_v19 = vadd.f32 %v416_v17, %v5675_v15  ;;  %v424_v22 = vsel %vm420_vm2, %v419_v21, -inf }
 0x2ac   :  { %v421_v20 = vsel %vm420_vm2, %v418_v19, -inf }
 0x2ad   :  { %422 = vmax.xlane.f32.xlu1 %v421_v20 }
 0x2b1   :  { %425 = vmax.xlane.f32.xlu1 %v424_v22 }
 0x336   :  { %v423_v23 = vpop.xlane.xlu1 %422 }
 0x337   :  { %v427_v24 = vsub.f32 %v418_v19, %v423_v23 }
 0x339   :  { %v429_v25 = vmul.f32 1.442695, %v427_v24 }
 0x33a   :  { %v426_v26 = vpop.xlane.xlu1 %425 }
 0x33b   :  { %5103 = vpow2.f32 %v429_v25  ;;  %v428_v27 = vsub.f32 %v419_v21, %v426_v26 }
 0x33d   :  { %v431_v28 = vmul.f32 1.442695, %v428_v27 }
 0x33f   :  { %5105 = vpow2.f32 %v431_v28 }
 0x348   :  { %v5104_v29 = vpop.eup %5103 }
 0x349   :  { %v433_v30 = vsel %vm420_vm2, %v5104_v29, 0.0 }
 0x34a   :  { %434 = vadd.xlane.f32.xlu0 %v433_v30  ;;  %v316_v30 = vld [vmem:[%s6267_s0 + $0x8] sm:$0xff] }
 0x34c   :  { %v5106_v31 = vpop.eup %5105 }
 0x34d   :  { %v436_v32 = vsel %vm420_vm2, %v5106_v31, 0.0 }
 0x34e   :  { %437 = vadd.xlane.f32.xlu1 %v436_v32 }
 0x35f   :  { %445 = vrot.lane.b32.xlu1 %v5659_v8, %s5453_s7 }
 0x360   :  { %613 = vrot.lane.b32.xlu0 %v5661_v10, %s5454_s3 }
 0x363   :  { %443 = vrot.lane.b32.xlu1 %v5661_v10, %s5453_s7 }
 0x367   :  { %619 = vrot.lane.b32.xlu1 %v5659_v8, %s5455_s9 }
 0x36b   :  { %617 = vrot.lane.b32.xlu1 %v5661_v10, %s5455_s9 }
 0x36f   :  { %615 = vrot.lane.b32.xlu1 %v5659_v8, %s5454_s3 }
 0x373   :  { %906 = vrot.lane.b32.xlu1 %v5659_v8, %s5456_s4 }
 0x377   :  { %904 = vrot.lane.b32.xlu1 %v5661_v10, %s5456_s4 }
 0x37b   :  { %900 = vrot.lane.b32.xlu1 %v5661_v10, %s5457_s8 }
 0x37f   :  { %902 = vrot.lane.b32.xlu1 %v5659_v8, %s5457_s8 }
 0x3d3   :  { %v435_v33 = vpop.xlane.xlu0 %434 }
 0x3d4   :  { %5107 = vrcp.f32 %v435_v33 }
 0x3d7   :  { %v438_v34 = vpop.xlane.xlu1 %437  ;;  %v614_v43 = vpop.permute.xlu0 %613 }
 0x3d8   :  { %5109 = vrcp.f32 %v438_v34 }
 0x3db   :  { %v446_v35 = vpop.permute.xlu1 %445 }
 0x3dc   :  { %4752 = vmatprep.subr.mxu0 %v446_v35 }
 0x3dd   :  { %4753 = vmatpush3.msra.mxu0 %v446_v35 }
 0x3df   :  { %v444_v36 = vpop.permute.xlu1 %443 }
 0x3e0   :  { %4754 = vmatprep.subr.mxu0 %v444_v36 }
 0x3e1   :  { %v5108_v37 = vpop.eup %5107  ;;  %4755 = vmatpush3.msra.mxu0 %v444_v36 }
 0x3e2   :  { %v441_v38 = vmul.f32 %v5108_v37, %v5104_v29 }
 0x3e3   :  { %v620_v39 = vpop.permute.xlu1 %619 }
 0x3e4   :  { %4756 = vmatprep.mubr.msk.f32.mxu0 %vm420_vm2, %v441_v38  ;;  %4764 = vmatprep.subr.msk.mxu0 %vm332_vm1, %v620_v39 }
 0x3e5   :  { %v5110_v40 = vpop.eup %5109 }
 0x3e6   :  { %v442_v41 = vmul.f32 %v5110_v40, %v5106_v31 }
 0x3e7   :  { %v618_v42 = vpop.permute.xlu1 %617 }
 0x3e8   :  { %4757 = vmatmul.mubr.msk.f32.vlgmr.msra.gmra.mxu0 %vm420_vm2, %v442_v41 }
 0x3e9   :  { %4765 = vmatpush3.xpose.msk.msra.mxu0 %vm332_vm1, %v620_v39  ;;  %4768 = vmatprep.mubr.msk.f32.mxu0 %vm332_vm1, %v614_v43 }
 0x3ea   :  { %4766 = vmatprep.subr.msk.mxu0 %vm332_vm1, %v618_v42 }
 0x3eb   :  { %v616_v44 = vpop.permute.xlu1 %615 }
 0x3ed   :  { %4767 = vmatpush3.xpose.msk.msra.mxu0 %vm332_vm1, %v618_v42 }
 0x3ef   :  { %v907_v45 = vpop.permute.xlu1 %906 }
 0x3f0   :  { %4769 = vmatmul.mubr.msk.f32.vlgmr.msra.gmra.mxu0 %vm332_vm1, %v616_v44  ;;  %4783 = vmatprep.subr.msk.mxu0 %vm332_vm1, %v907_v45 }
 0x3f1   :  { %4784 = vmatpush3.xpose.msk.msra.mxu0 %vm332_vm1, %v907_v45 }
 0x3f3   :  { %v905_v46 = vpop.permute.xlu1 %904 }
 0x3f4   :  { %4785 = vmatprep.subr.msk.mxu0 %vm332_vm1, %v905_v46 }
 0x3f5   :  { %4786 = vmatpush3.xpose.msk.msra.mxu0 %vm332_vm1, %v905_v46 }
 0x3f7   :  { %v901_v47 = vpop.permute.xlu1 %900 }
 0x3f8   :  { %4787 = vmatprep.mubr.msk.f32.mxu0 %vm332_vm1, %v901_v47 }
 0x3fb   :  { %v903_v48 = vpop.permute.xlu1 %902 }
 0x3fc   :  { %4788 = vmatmul.mubr.msk.f32.vlgmr.msra.gmra.mxu0 %vm332_vm1, %v903_v48 }
 0x4a8   :  { %v4758_v50 = vpop.f32.mrf.mxu0 }
 0x4aa   :  { %v521_v51 = vpop.f32.mrf.mxu0 }
 0x4ab   :  { %4761 = vmatprep.mubr.msk.f32.mxu1 %vm332_vm1, %v521_v51 }
 0x4ac   :  { %4762 = vmatmul.mubr.msk.f32.vlgmr.msra.gmra.mxu1 %vm332_vm1, %v4758_v50 }
 0x4b0   :  { %v4770_v52 = vpop.f32.mrf.mxu0 }
 0x4b1   :  { %v705_v53 = vmul.f32 0.35355338, %v4770_v52 }
 0x4b2   :  { %v695_v54 = vpop.f32.mrf.mxu0 }
 0x4b3   :  { %v704_v55 = vmul.f32 0.35355338, %v695_v54  ;;  %v707_v56 = vadd.f32 %v705_v53, %v5677_v18 }
 0x4b5   :  { %v711_v57 = vsel %vm420_vm2, %v707_v56, -inf  ;;  %v706_v58 = vadd.f32 %v704_v55, %v5675_v15 }
 0x4b6   :  { %712 = vmax.xlane.f32.xlu1 %v711_v57 }
 0x4b7   :  { %v708_v59 = vsel %vm420_vm2, %v706_v58, -inf }
 0x4b8   :  { %709 = vmax.xlane.f32.xlu0 %v708_v59 }
 0x4bc   :  { %v4789_v60 = vpop.f32.mrf.mxu0 }
 0x4bd   :  { %v992_v61 = vmul.f32 0.35355338, %v4789_v60 }
 0x4be   :  { %v982_v21 = vpop.f32.mrf.mxu0 }
 0x4bf   :  { %v994_v62 = vadd.f32 %v992_v61, %v5677_v18  ;;  %v991_v22 = vmul.f32 0.35355338, %v982_v21  ;;  %v317_v61 = vld [vmem:[%s6267_s0 + $0x10] sm:$0xff] }
 0x4c1   :  { %v998_v63 = vsel %vm420_vm2, %v994_v62, -inf  ;;  %v993_v23 = vadd.f32 %v991_v22, %v5675_v15 }
 0x4c3   :  { %v995_v24 = vsel %vm420_vm2, %v993_v23, -inf }
 0x4c7   :  { %732 = vrot.lane.b32.xlu1 %v5659_v8, %s5458_s10 }
 0x4cb   :  { %1193 = vrot.lane.b32.xlu1 %v5659_v8, %s5459_s29 }
 0x4cf   :  { %1191 = vrot.lane.b32.xlu1 %v5661_v10, %s5459_s29 }
 0x4d3   :  { %1189 = vrot.lane.b32.xlu1 %v5659_v8, %s5460_s14 }
 0x4f7   :  { %999 = vmax.xlane.f32.xlu1 %v998_v63 }
 0x508   :  { %1019 = vrot.lane.b32.xlu1 %v5659_v8, %s5461_s1 }
 0x53f   :  { %v713_v0 = vpop.xlane.xlu1 %712 }
 0x540   :  { %v715_v1 = vsub.f32 %v707_v56, %v713_v0 }
 0x541   :  { %v710_v2 = vpop.xlane.xlu0 %709 }
 0x542   :  { %v718_v3 = vmul.f32 1.442695, %v715_v1  ;;  %v714_v4 = vsub.f32 %v706_v58, %v710_v2 }
 0x543   :  { %v733_v5 = vpop.permute.xlu1 %732 }
 0x544   :  { %5111 = vpow2.f32 %v718_v3  ;;  %v716_v6 = vmul.f32 1.442695, %v714_v4  ;;  %4771 = vmatprep.subr.mxu1 %v733_v5 }
 0x545   :  { %4772 = vmatpush3.msra.mxu1 %v733_v5 }
 0x546   :  { %5113 = vpow2.f32 %v716_v6 }
 0x547   :  { %v1194_v7 = vpop.permute.xlu1 %1193 }
 0x548   :  { %4802 = vmatprep.subr.msk.mxu0 %vm332_vm1, %v1194_v7 }
 0x549   :  { %4803 = vmatpush3.xpose.msk.msra.mxu0 %vm332_vm1, %v1194_v7 }
 0x54b   :  { %v1192_v9 = vpop.permute.xlu1 %1191 }
 0x54c   :  { %4804 = vmatprep.subr.msk.mxu0 %vm332_vm1, %v1192_v9 }
 0x54d   :  { %4805 = vmatpush3.xpose.msk.msra.mxu0 %vm332_vm1, %v1192_v9  ;;  %v4447_v9 = vld [vmem:[#allocation10] ss:$0 sm:$0xff] }
 0x54f   :  { %v1190_v16 = vpop.permute.xlu1 %1189 }
 0x551   :  { %v5112_v11 = vpop.eup %5111 }
 0x552   :  { %v723_v12 = vsel %vm420_vm2, %v5112_v11, 0.0 }
 0x553   :  { %v5114_v13 = vpop.eup %5113  ;;  %724 = vadd.xlane.f32.xlu0 %v723_v12 }
 0x554   :  { %v720_v14 = vsel %vm420_vm2, %v5114_v13, 0.0 }
 0x557   :  { %721 = vadd.xlane.f32.xlu0 %v720_v14 }
 0x56c   :  { %v4763_v44 = vpop.f32.mrf.mxu1 }
 0x56d   :  { %730 = vrot.lane.b32.xlu0 %v5661_v10, %s5458_s10 }
 0x56e   :  { %v5766_v50 = vpop.f32.mrf.mxu1 }
 0x571   :  { %1187 = vrot.lane.b32.xlu0 %v5661_v10, %s5460_s14 }
 0x580   :  { %v1000_v17 = vpop.xlane.xlu1 %999 }
 0x581   :  { %v1002_v19 = vsub.f32 %v994_v62, %v1000_v17 }
 0x583   :  { %v1005_v20 = vmul.f32 1.442695, %v1002_v19 }
 0x584   :  { %v1020_v36 = vpop.permute.xlu1 %1019 }
 0x585   :  { %5115 = vpow2.f32 %v1005_v20 }
 0x590   :  { %996 = vmax.xlane.f32.xlu0 %v995_v24 }
 0x592   :  { %v5116_v25 = vpop.eup %5115 }
 0x593   :  { %v1010_v26 = vsel %vm420_vm2, %v5116_v25, 0.0 }
 0x594   :  { %1011 = vadd.xlane.f32.xlu0 %v1010_v26  ;;  %v1477_v26 = vld [vmem:[%s6268_s12 + $0x18] sm:$0xff] }
 0x595   :  { %4821 = vmatprep.subr.mxu0 %v1477_v26 }
 0x5dc   :  { %v725_v27 = vpop.xlane.xlu0 %724 }
 0x5dd   :  { %5117 = vrcp.f32 %v725_v27 }
 0x5e0   :  { %v722_v28 = vpop.xlane.xlu0 %721 }
 0x5e1   :  { %5119 = vrcp.f32 %v722_v28 }
 0x5e4   :  { %v731_v29 = vpop.permute.xlu0 %730 }
 0x5e5   :  { %4773 = vmatprep.subr.mxu1 %v731_v29 }
 0x5e6   :  { %4774 = vmatpush3.msra.mxu1 %v731_v29 }
 0x5e7   :  { %4778 = vmatprep.subr.mxu1 %v316_v30 }
 0x5e8   :  { %v1188_v31 = vpop.permute.xlu0 %1187 }
 0x5e9   :  { %4806 = vmatprep.mubr.msk.f32.mxu0 %vm332_vm1, %v1188_v31 }
 0x5ea   :  { %4807 = vmatmul.mubr.msk.f32.vlgmr.msra.gmra.mxu0 %vm332_vm1, %v1190_v16  ;;  %v5118_v32 = vpop.eup %5117 }
 0x5eb   :  { %v729_v35 = vmul.f32 %v5118_v32, %v5112_v11  ;;  %v612_v11 = vadd.f32 %v4763_v44, %v4447_v9  ;;  %4822 = vmatpush3.msra.mxu0 %v1477_v26  ;;  %v1476_v32 = vld [vmem:[%s6268_s12 + $0x10] sm:$0xff] }
 0x5ec   :  { %4823 = vmatprep.subr.mxu0 %v1476_v32 }
 0x5ed   :  { %4824 = vmatpush3.msra.mxu0 %v1476_v32 }
 0x5ee   :  { %v5120_v33 = vpop.eup %5119 }
 0x5ef   :  { %v728_v34 = vmul.f32 %v5120_v33, %v5114_v13  ;;  %v1475_v33 = vld [vmem:[%s6268_s12 + $0x8] sm:$0xff] }
 0x5f0   :  { %4825 = vmatprep.subr.mxu0 %v1475_v33 }
 0x5f1   :  { %4775 = vmatprep.mubr.msk.f32.mxu1 %vm420_vm2, %v728_v34  ;;  %v1474_v34 = vld [vmem:[%s6268_s12] sm:$0xff]  ;;  %4826 = vmatpush3.msra.mxu0 %v1475_v33 }
 0x5f2   :  { %4776 = vmatmul.mubr.msk.f32.vlgmr.msra.gmra.mxu1 %vm420_vm2, %v729_v35  ;;  %4827 = vmatprep.subr.mxu0 %v1474_v34 }
 0x5f3   :  { %4779 = vmatpush3.msra.mxu1 %v316_v30  ;;  %4828 = vmatpush3.msra.mxu0 %v1474_v34 }
 0x5f4   :  { %4790 = vmatprep.subr.mxu1 %v1020_v36 }
 0x619   :  { %v997_v37 = vpop.xlane.xlu0 %996 }
 0x61a   :  { %v1001_v38 = vsub.f32 %v993_v23, %v997_v37 }
 0x61c   :  { %v1003_v39 = vmul.f32 1.442695, %v1001_v38 }
 0x61d   :  { %v1012_v52 = vpop.xlane.xlu0 %1011 }
 0x61e   :  { %5121 = vpow2.f32 %v1003_v39  ;;  %v611_v39 = vadd.f32 %v4447_v9, %v5766_v50  ;;  %v1668_v50 = vld [vmem:[%s6270_s5 + $0x18] sm:$0xff] }
 0x61f   :  { %5123 = vrcp.f32 %v1012_v52  ;;  %4851 = vmatprep.subr.mxu0 %v1668_v50 }
 0x62b   :  { %v5122_v40 = vpop.eup %5121 }
 0x62c   :  { %v1007_v41 = vsel %vm420_vm2, %v5122_v40, 0.0  ;;  %v5124_v57 = vpop.eup %5123 }
 0x62d   :  { %1008 = vadd.xlane.f32.xlu0 %v1007_v41  ;;  %v1016_v60 = vmul.f32 %v5124_v57, %v5116_v25  ;;  %v318_v25 = vld [vmem:[%s6267_s0 + $0x18] sm:$0xff] }
 0x643   :  { %1017 = vrot.lane.b32.xlu0 %v5661_v10, %s5461_s1 }
 0x6aa   :  { %v4808_v42 = vpop.f32.mrf.mxu0 }
 0x6ab   :  { %v1279_v43 = vmul.f32 0.35355338, %v4808_v42 }
 0x6ac   :  { %v1269_v45 = vpop.f32.mrf.mxu0 }
 0x6ad   :  { %v1278_v46 = vmul.f32 0.35355338, %v1269_v45  ;;  %v1281_v47 = vadd.f32 %v1279_v43, %v5677_v18 }
 0x6af   :  { %v1285_v48 = vsel %vm420_vm2, %v1281_v47, -inf  ;;  %v1280_v49 = vadd.f32 %v1278_v46, %v5675_v15 }
 0x6b0   :  { %1286 = vmax.xlane.f32.xlu0 %v1285_v48 }
 0x6b1   :  { %v1282_v51 = vsel %vm420_vm2, %v1280_v49, -inf }
 0x6b2   :  { %v4777_v53 = vpop.f32.mrf.mxu1  ;;  %1283 = vmax.xlane.f32.xlu1 %v1282_v51  ;;  %v4480_v51 = vld [vmem:[#allocation11] ss:$0 sm:$0xff] }
 0x6b4   :  { %v808_v54 = vpop.f32.mrf.mxu1 }
 0x6b5   :  { %4780 = vmatprep.mubr.msk.f32.mxu1 %vm332_vm1, %v808_v54 }
 0x6b6   :  { %4781 = vmatmul.mubr.msk.f32.vlgmr.msra.gmra.mxu1 %vm332_vm1, %v4777_v53  ;;  %v1009_v55 = vpop.xlane.xlu0 %1008 }
 0x6b7   :  { %5125 = vrcp.f32 %v1009_v55  ;;  %4791 = vmatpush3.msra.mxu1 %v1020_v36 }
 0x6ba   :  { %v1018_v56 = vpop.permute.xlu0 %1017 }
 0x6bb   :  { %4792 = vmatprep.subr.mxu1 %v1018_v56 }
 0x6bc   :  { %4793 = vmatpush3.msra.mxu1 %v1018_v56 }
 0x6bd   :  { %4797 = vmatprep.subr.mxu1 %v317_v61 }
 0x6c4   :  { %v5126_v58 = vpop.eup %5125 }
 0x6c5   :  { %v1015_v59 = vmul.f32 %v5126_v58, %v5122_v40  ;;  %v1667_v58 = vld [vmem:[%s6270_s5 + $0x10] sm:$0xff] }
 0x6c7   :  { %4794 = vmatprep.mubr.msk.f32.mxu1 %vm420_vm2, %v1015_v59  ;;  %v1666_v59 = vld [vmem:[%s6270_s5 + $0x8] sm:$0xff] }
 0x6c8   :  { %4795 = vmatmul.mubr.msk.f32.vlgmr.msra.gmra.mxu1 %vm420_vm2, %v1016_v60  ;;  %v1665_v60 = vld [vmem:[%s6270_s5] sm:$0xff] }
 0x6c9   :  { %4798 = vmatpush3.msra.mxu1 %v317_v61 }
 0x739   :  { %v1287_v62 = vpop.xlane.xlu0 %1286 }
 0x73a   :  { %v1289_v63 = vsub.f32 %v1281_v47, %v1287_v62  ;;  %v4483_v62 = vld [vmem:[#allocation13] ss:$0 sm:$0xff] }
 0x73b   :  { %v1284_v0 = vpop.xlane.xlu1 %1283 }
 0x73c   :  { %v1292_v1 = vmul.f32 1.442695, %v1289_v63  ;;  %v1288_v2 = vsub.f32 %v1280_v49, %v1284_v0 }
 0x73e   :  { %5127 = vpow2.f32 %v1292_v1  ;;  %v1290_v3 = vmul.f32 1.442695, %v1288_v2  ;;  %v4486_v2 = vld [vmem:[#allocation14] ss:$0 sm:$0xff] }
 0x740   :  { %5129 = vpow2.f32 %v1290_v3 }
 0x74b   :  { %v5128_v4 = vpop.eup %5127 }
 0x74c   :  { %v1297_v5 = vsel %vm420_vm2, %v5128_v4, 0.0 }
 0x74d   :  { %v5130_v6 = vpop.eup %5129  ;;  %1298 = vadd.xlane.f32.xlu0 %v1297_v5 }
 0x74e   :  { %v1294_v7 = vsel %vm420_vm2, %v5130_v6, 0.0 }
 0x74f   :  { %1295 = vadd.xlane.f32.xlu1 %v1294_v7 }
 0x760   :  { %1306 = vrot.lane.b32.xlu1 %v5659_v8, %s6244_s30 }
 0x763   :  { %1304 = vrot.lane.b32.xlu0 %v5661_v10, %s6244_s30  ;;  %s6269_s30 = sld [smem:[#allocation37_spill]] }
 0x769   :  { %v1575_v35 = vld [vmem:[%s6269_s30 + $0x38] sm:$0xff]  ;;  %v1574_v36 = vld [vmem:[%s6269_s30 + $0x30] sm:$0xff]  ;;  %v1573_v37 = vld [vmem:[%s6269_s30 + $0x28] sm:$0xff] }
 0x76a   :  { %v1572_v38 = vld [vmem:[%s6269_s30 + $0x20] sm:$0xff]  ;;  %v1571_v46 = vld [vmem:[%s6269_s30 + $0x18] sm:$0xff]  ;;  %v1570_v47 = vld [vmem:[%s6269_s30 + $0x10] sm:$0xff] }
 0x76b   :  { %v1569_v48 = vld [vmem:[%s6269_s30 + $0x8] sm:$0xff]  ;;  %v1568_v49 = vld [vmem:[%s6269_s30] sm:$0xff] }
 0x776   :  { %v4782_v12 = vpop.f32.mrf.mxu1 }
 0x777   :  { %v899_v13 = vadd.f32 %v4782_v12, %v612_v11 }
 0x778   :  { %v889_v14 = vpop.f32.mrf.mxu1 }
 0x779   :  { %v898_v40 = vadd.f32 %v889_v14, %v611_v39 }
 0x788   :  { %v4796_v16 = vpop.f32.mrf.mxu1 }
 0x78a   :  { %v1095_v17 = vpop.f32.mrf.mxu1 }
 0x78b   :  { %4799 = vmatprep.mubr.msk.f32.mxu1 %vm332_vm1, %v1095_v17 }
 0x78c   :  { %4800 = vmatmul.mubr.msk.f32.vlgmr.msra.gmra.mxu1 %vm332_vm1, %v4796_v16 }
 0x7d6   :  { %v1299_v19 = vpop.xlane.xlu0 %1298 }
 0x7d7   :  { %5131 = vrcp.f32 %v1299_v19 }
 0x7d8   :  { %v1296_v20 = vpop.xlane.xlu1 %1295 }
 0x7d9   :  { %5133 = vrcp.f32 %v1296_v20 }
 0x7da   :  { %v1305_v8 = vpop.permute.xlu0 %1304 }
 0x7dc   :  { %v1307_v21 = vpop.permute.xlu1 %1306 }
 0x7dd   :  { %4809 = vmatprep.subr.mxu1 %v1307_v21 }
 0x7de   :  { %4810 = vmatpush3.msra.mxu1 %v1307_v21 }
 0x7df   :  { %4811 = vmatprep.subr.mxu1 %v1305_v8 }
 0x7e0   :  { %4812 = vmatpush3.msra.mxu1 %v1305_v8 }
 0x7e1   :  { %4816 = vmatprep.subr.mxu1 %v318_v25 }
 0x7e4   :  { %v5132_v10 = vpop.eup %5131 }
 0x7e5   :  { %v1303_v24 = vmul.f32 %v5132_v10, %v5128_v4 }
 0x7e6   :  { %v5134_v22 = vpop.eup %5133 }
 0x7e7   :  { %v1302_v23 = vmul.f32 %v5134_v22, %v5130_v6 }
 0x7e9   :  { %4813 = vmatprep.mubr.msk.f32.mxu1 %vm420_vm2, %v1302_v23 }
 0x7ea   :  { %4814 = vmatmul.mubr.msk.f32.vlgmr.msra.gmra.mxu1 %vm420_vm2, %v1303_v24 }
 0x7eb   :  { %4817 = vmatpush3.msra.mxu1 %v318_v25 }
 0x7ec   :  { %4832 = vmatprep.subr.mxu1 %v1575_v35 }
 0x84c   :  { %v4801_v27 = vpop.f32.mrf.mxu1 }
 0x84d   :  { %v1186_v28 = vadd.f32 %v4801_v27, %v899_v13 }
 0x84e   :  { %v1176_v29 = vpop.f32.mrf.mxu1 }
 0x84f   :  { %v1185_v42 = vadd.f32 %v1176_v29, %v898_v40 }
 0x8aa   :  { %v4815_v30 = vpop.f32.mrf.mxu1 }
 0x8ac   :  { %v1382_v31 = vpop.f32.mrf.mxu1 }
 0x8ad   :  { %4818 = vmatprep.mubr.msk.f32.mxu1 %vm332_vm1, %v1382_v31 }
 0x8ae   :  { %4819 = vmatmul.mubr.msk.f32.vlgmr.msra.gmra.mxu1 %vm332_vm1, %v4815_v30 }
 0x8af   :  { %4833 = vmatpush3.msra.mxu1 %v1575_v35 }
 0x8b0   :  { %4834 = vmatprep.subr.mxu1 %v1574_v36 }
 0x8b1   :  { %4835 = vmatpush3.msra.mxu1 %v1574_v36 }
 0x8b2   :  { %4836 = vmatprep.subr.mxu1 %v1573_v37 }
 0x8b3   :  { %4837 = vmatpush3.msra.mxu1 %v1573_v37 }
 0x8b4   :  { %4838 = vmatprep.subr.mxu1 %v1572_v38 }
 0x8b5   :  { %4839 = vmatpush3.msra.mxu1 %v1572_v38 }
 0x8b6   :  { %4840 = vmatprep.subr.mxu1 %v1571_v46 }
 0x8b7   :  { %4841 = vmatpush3.msra.mxu1 %v1571_v46 }
 0x8b8   :  { %4842 = vmatprep.subr.mxu1 %v1570_v47 }
 0x8b9   :  { %4843 = vmatpush3.msra.mxu1 %v1570_v47 }
 0x8ba   :  { %4844 = vmatprep.subr.mxu1 %v1569_v48 }
 0x8bb   :  { %4845 = vmatpush3.msra.mxu1 %v1569_v48 }
 0x8bc   :  { %4846 = vmatprep.subr.mxu1 %v1568_v49 }
 0x8bd   :  { %4847 = vmatpush3.msra.mxu1 %v1568_v49 }
 0x96e   :  { %v4820_v41 = vpop.f32.mrf.mxu1 }
 0x96f   :  { %v1473_v45 = vadd.f32 %v4820_v41, %v1186_v28 }
 0x970   :  { %v1463_v43 = vpop.f32.mrf.mxu1 }
 0x971   :  { %v1472_v44 = vadd.f32 %v1463_v43, %v1185_v42 }
 0x973   :  { %4829 = vmatprep.mubr.msk.f32.mxu0 %vm233_vm0, %v1472_v44 }
 0x974   :  { %4830 = vmatmul.mubr.msk.f32.vlgmr.msra.gmra.mxu0 %vm233_vm0, %v1473_v45 }
 0x975   :  { %4852 = vmatpush3.msra.mxu0 %v1668_v50 }
 0x976   :  { %4853 = vmatprep.subr.mxu0 %v1667_v58 }
 0x977   :  { %4854 = vmatpush3.msra.mxu0 %v1667_v58 }
 0x978   :  { %4855 = vmatprep.subr.mxu0 %v1666_v59 }
 0x979   :  { %4856 = vmatpush3.msra.mxu0 %v1666_v59 }
 0x97a   :  { %4857 = vmatprep.subr.mxu0 %v1665_v60 }
 0x97b   :  { %4858 = vmatpush3.msra.mxu0 %v1665_v60 }
 0xa34   :  { %v4831_v52 = vpop.f32.mrf.mxu0 }
 0xa35   :  { %v1563_v53 = vadd.f32 %v4831_v52, %v4480_v51 }
 0xa36   :  { %v1557_v54 = vpop.f32.mrf.mxu0 }
 0xa37   :  { %v1558_v55 = vadd.f32 %v4480_v51, %v1557_v54  ;;  %v1567_v57 = vmax.f32 %v1563_v53, 0.0 }
 0xa39   :  { %v1566_v56 = vmax.f32 %v1558_v55, 0.0  ;;  %v1757_v55 = vld [vmem:[%s6224_s13] sm:$0xff] }
 0xa3b   :  { %4848 = vmatprep.mubr.msk.f32.mxu1 %vm1583_vm3, %v1566_v56 }
 0xa3c   :  { %4849 = vmatmul.mubr.msk.f32.vlgmr.msra.gmra.mxu1 %vm1583_vm3, %v1567_v57 }
 0xafc   :  { %v4850_v61 = vpop.f32.mrf.mxu1 }
 0xafd   :  { %v1662_v1 = vadd.f32 %v4850_v61, %v4483_v62 }
 0xafe   :  { %v1656_v63 = vpop.f32.mrf.mxu1 }
 0xaff   :  { %v1657_v0 = vadd.f32 %v4483_v62, %v1656_v63 }
 0xb01   :  { %4859 = vmatprep.mubr.msk.f32.mxu0 %vm233_vm0, %v1657_v0 }
 0xb02   :  { %4860 = vmatmul.mubr.msk.f32.vlgmr.msra.gmra.mxu0 %vm233_vm0, %v1662_v1 }
 0xbc2   :  { %v4861_v3 = vpop.f32.mrf.mxu0 }
 0xbc3   :  { %v5846_v4 = vadd.f32 %v4861_v3, %v4486_v2 }
 0xbc4   :  { %v1748_v5 = vpop.f32.mrf.mxu0 }
 0xbc5   :  { %v5848_v6 = vadd.f32 %v4486_v2, %v1748_v5  ;;  %2059 = vrot.lane.b32.xlu0 %v5846_v4, %s5455_s9  ;;  %1772 = vrot.lane.b32.xlu1 %v5846_v4, %s5452_s16 }
 0xbc7   :  { %4866 = vmatprep.mubr.msk.f32.mxu0 %vm332_vm1, %v5848_v6 }
 0xbc9   :  { %2053 = vrot.lane.b32.xlu0 %v5848_v6, %s5454_s3  ;;  %1770 = vrot.lane.b32.xlu1 %v5848_v6, %s5452_s16 }
 0xbcd   :  { %2057 = vrot.lane.b32.xlu1 %v5848_v6, %s5455_s9 }
 0xbd1   :  { %2055 = vrot.lane.b32.xlu1 %v5846_v4, %s5454_s3 }
 0xc37   :  { %v1773_v7 = vpop.permute.xlu1 %1772  ;;  %v2060_v9 = vpop.permute.xlu0 %2059 }
 0xc38   :  { %4862 = vmatprep.subr.msk.mxu0 %vm332_vm1, %v1773_v7 }
 0xc39   :  { %4863 = vmatpush3.xpose.msk.msra.mxu0 %vm332_vm1, %v1773_v7 }
 0xc3b   :  { %v1771_v11 = vpop.permute.xlu1 %1770  ;;  %v2054_v12 = vpop.permute.xlu0 %2053 }
 0xc3c   :  { %4864 = vmatprep.subr.msk.mxu0 %vm332_vm1, %v1771_v11 }
 0xc3d   :  { %4865 = vmatpush3.xpose.msk.msra.mxu0 %vm332_vm1, %v1771_v11 }
 0xc3e   :  { %4881 = vmatprep.subr.msk.mxu0 %vm332_vm1, %v2060_v9 }
 0xc3f   :  { %v2058_v13 = vpop.permute.xlu1 %2057 }
 0xc40   :  { %4867 = vmatmul.mubr.msk.f32.vlgmr.msra.gmra.mxu0 %vm332_vm1, %v5846_v4 }
 0xc41   :  { %4882 = vmatpush3.xpose.msk.msra.mxu0 %vm332_vm1, %v2060_v9  ;;  %4885 = vmatprep.mubr.msk.f32.mxu0 %vm332_vm1, %v2054_v12 }
 0xc42   :  { %4883 = vmatprep.subr.msk.mxu0 %vm332_vm1, %v2058_v13 }
 0xc43   :  { %v2056_v14 = vpop.permute.xlu1 %2055 }
 0xc45   :  { %4884 = vmatpush3.xpose.msk.msra.mxu0 %vm332_vm1, %v2058_v13 }
 0xc48   :  { %4886 = vmatmul.mubr.msk.f32.vlgmr.msra.gmra.mxu0 %vm332_vm1, %v2056_v14 }
 0xd00   :  { %v4868_v16 = vpop.f32.mrf.mxu0 }
 0xd01   :  { %v1858_v17 = vmul.f32 0.35355338, %v4868_v16 }
 0xd02   :  { %v1848_v19 = vpop.f32.mrf.mxu0 }
 0xd03   :  { %v1857_v20 = vmul.f32 0.35355338, %v1848_v19  ;;  %v1860_v21 = vadd.f32 %v1858_v17, %v5677_v18 }
 0xd05   :  { %v1864_v8 = vsel %vm420_vm2, %v1860_v21, -inf  ;;  %v1859_v10 = vadd.f32 %v1857_v20, %v5675_v15 }
 0xd06   :  { %1865 = vmax.xlane.f32.xlu1 %v1864_v8 }
 0xd07   :  { %v1861_v22 = vsel %vm420_vm2, %v1859_v10, -inf }
 0xd08   :  { %1862 = vmax.xlane.f32.xlu0 %v1861_v22  ;;  %v4887_v23 = vpop.f32.mrf.mxu0 }
 0xd09   :  { %v2145_v24 = vmul.f32 0.35355338, %v4887_v23 }
 0xd0a   :  { %v2135_v44 = vpop.f32.mrf.mxu0 }
 0xd0b   :  { %v2147_v25 = vadd.f32 %v2145_v24, %v5677_v18  ;;  %v2144_v46 = vmul.f32 0.35355338, %v2135_v44  ;;  %v5184_v44 = vld [vmem:[#allocation5] sm:$0xff] }
 0xd0d   :  { %v2151_v26 = vsel %vm420_vm2, %v2147_v25, -inf  ;;  %v2146_v48 = vadd.f32 %v2144_v46, %v5675_v15 }
 0xd0f   :  { %v2148_v49 = vsel %vm420_vm2, %v2146_v48, -inf }
 0xd17   :  { %1885 = vrot.lane.b32.xlu1 %v5846_v4, %s5453_s7 }
 0xd1b   :  { %2346 = vrot.lane.b32.xlu1 %v5846_v4, %s5456_s4 }
 0xd1f   :  { %2344 = vrot.lane.b32.xlu1 %v5848_v6, %s5456_s4 }
 0xd23   :  { %2342 = vrot.lane.b32.xlu1 %v5846_v4, %s5457_s8 }
 0xd47   :  { %2152 = vmax.xlane.f32.xlu1 %v2151_v26 }
 0xd58   :  { %2172 = vrot.lane.b32.xlu1 %v5846_v4, %s5458_s10 }
 0xd5c   :  { %2633 = vrot.lane.b32.xlu1 %v5846_v4, %s5459_s29 }
 0xd60   :  { %2631 = vrot.lane.b32.xlu1 %v5848_v6, %s5459_s29 }
 0xd64   :  { %2629 = vrot.lane.b32.xlu1 %v5846_v4, %s5460_s14 }
 0xd8f   :  { %v1866_v27 = vpop.xlane.xlu1 %1865 }
 0xd90   :  { %v1868_v28 = vsub.f32 %v1860_v21, %v1866_v27 }
 0xd91   :  { %v1863_v29 = vpop.xlane.xlu0 %1862 }
 0xd92   :  { %v1871_v30 = vmul.f32 1.442695, %v1868_v28  ;;  %v1867_v31 = vsub.f32 %v1859_v10, %v1863_v29 }
 0xd93   :  { %v1886_v32 = vpop.permute.xlu1 %1885 }
 0xd94   :  { %5135 = vpow2.f32 %v1871_v30  ;;  %v1869_v33 = vmul.f32 1.442695, %v1867_v31  ;;  %4869 = vmatprep.subr.mxu1 %v1886_v32 }
 0xd95   :  { %4870 = vmatpush3.msra.mxu1 %v1886_v32 }
 0xd96   :  { %5137 = vpow2.f32 %v1869_v33 }
 0xd97   :  { %v2347_v34 = vpop.permute.xlu1 %2346 }
 0xd98   :  { %4900 = vmatprep.subr.msk.mxu0 %vm332_vm1, %v2347_v34 }
 0xd99   :  { %4901 = vmatpush3.xpose.msk.msra.mxu0 %vm332_vm1, %v2347_v34 }
 0xd9b   :  { %v2345_v35 = vpop.permute.xlu1 %2344 }
 0xd9c   :  { %4902 = vmatprep.subr.msk.mxu0 %vm332_vm1, %v2345_v35 }
 0xd9d   :  { %4903 = vmatpush3.xpose.msk.msra.mxu0 %vm332_vm1, %v2345_v35 }
 0xd9f   :  { %v2343_v40 = vpop.permute.xlu1 %2342 }
 0xda1   :  { %v5136_v36 = vpop.eup %5135 }
 0xda2   :  { %v1876_v37 = vsel %vm420_vm2, %v5136_v36, 0.0 }
 0xda3   :  { %v5138_v38 = vpop.eup %5137  ;;  %1877 = vadd.xlane.f32.xlu0 %v1876_v37 }
 0xda4   :  { %v1873_v39 = vsel %vm420_vm2, %v5138_v38, 0.0 }
 0xda7   :  { %1874 = vadd.xlane.f32.xlu0 %v1873_v39 }
 0xdbd   :  { %1883 = vrot.lane.b32.xlu0 %v5848_v6, %s5453_s7 }
 0xdc1   :  { %2340 = vrot.lane.b32.xlu0 %v5848_v6, %s5457_s8 }
 0xdd0   :  { %v2153_v41 = vpop.xlane.xlu1 %2152 }
 0xdd1   :  { %v2155_v42 = vsub.f32 %v2147_v25, %v2153_v41  ;;  %v5183_v41 = vld [vmem:[#allocation5 + $0x8] sm:$0xff] }
 0xdd3   :  { %v2158_v43 = vmul.f32 1.442695, %v2155_v42 }
 0xdd4   :  { %v2173_v45 = vpop.permute.xlu1 %2172 }
 0xdd5   :  { %5139 = vpow2.f32 %v2158_v43 }
 0xdd8   :  { %v2634_v47 = vpop.permute.xlu1 %2633 }
 0xdd9   :  { %4919 = vmatprep.subr.msk.mxu0 %vm332_vm1, %v2634_v47 }
 0xddc   :  { %v2632_v57 = vpop.permute.xlu1 %2631 }
 0xde0   :  { %2149 = vmax.xlane.f32.xlu0 %v2148_v49  ;;  %v2630_v8 = vpop.permute.xlu1 %2629 }
 0xde2   :  { %v5911_v50 = vpop.eup %5139 }
 0xde3   :  { %v2163_v51 = vsel %vm420_vm2, %v5911_v50, 0.0 }
 0xde4   :  { %2164 = vadd.xlane.f32.xlu0 %v2163_v51 }
 0xe2c   :  { %v1878_v52 = vpop.xlane.xlu0 %1877 }
 0xe2d   :  { %5141 = vrcp.f32 %v1878_v52 }
 0xe30   :  { %v1875_v53 = vpop.xlane.xlu0 %1874 }
 0xe31   :  { %5143 = vrcp.f32 %v1875_v53 }
 0xe34   :  { %v1884_v54 = vpop.permute.xlu0 %1883 }
 0xe35   :  { %4871 = vmatprep.subr.mxu1 %v1884_v54 }
 0xe36   :  { %4872 = vmatpush3.msra.mxu1 %v1884_v54 }
 0xe37   :  { %4876 = vmatprep.subr.mxu1 %v1757_v55 }
 0xe38   :  { %v2341_v56 = vpop.permute.xlu0 %2340 }
 0xe39   :  { %4904 = vmatprep.mubr.msk.f32.mxu0 %vm332_vm1, %v2341_v56 }
 0xe3a   :  { %4905 = vmatmul.mubr.msk.f32.vlgmr.msra.gmra.mxu0 %vm332_vm1, %v2343_v40  ;;  %v5142_v58 = vpop.eup %5141 }
 0xe3b   :  { %4920 = vmatpush3.xpose.msk.msra.mxu0 %vm332_vm1, %v2634_v47  ;;  %v1882_v61 = vmul.f32 %v5142_v58, %v5136_v36 }
 0xe3c   :  { %4921 = vmatprep.subr.msk.mxu0 %vm332_vm1, %v2632_v57 }
 0xe3e   :  { %v5144_v59 = vpop.eup %5143 }
 0xe3f   :  { %4922 = vmatpush3.xpose.msk.msra.mxu0 %vm332_vm1, %v2632_v57  ;;  %v1881_v60 = vmul.f32 %v5144_v59, %v5138_v38 }
 0xe41   :  { %4873 = vmatprep.mubr.msk.f32.mxu1 %vm420_vm2, %v1881_v60 }
 0xe42   :  { %4874 = vmatmul.mubr.msk.f32.vlgmr.msra.gmra.mxu1 %vm420_vm2, %v1882_v61 }
 0xe43   :  { %4877 = vmatpush3.msra.mxu1 %v1757_v55 }
 0xe44   :  { %4888 = vmatprep.subr.mxu1 %v2173_v45 }
 0xe69   :  { %v2150_v62 = vpop.xlane.xlu0 %2149 }
 0xe6a   :  { %v2154_v63 = vsub.f32 %v2146_v48, %v2150_v62 }
 0xe6c   :  { %v2156_v0 = vmul.f32 1.442695, %v2154_v63 }
 0xe6d   :  { %v2165_v16 = vpop.xlane.xlu0 %2164 }
 0xe6e   :  { %5145 = vpow2.f32 %v2156_v0 }
 0xe6f   :  { %5147 = vrcp.f32 %v2165_v16 }
 0xe7b   :  { %v5146_v1 = vpop.eup %5145 }
 0xe7c   :  { %v2160_v2 = vsel %vm420_vm2, %v5146_v1, 0.0  ;;  %v5148_v10 = vpop.eup %5147 }
 0xe7d   :  { %2161 = vadd.xlane.f32.xlu0 %v2160_v2  ;;  %v2169_v24 = vmul.f32 %v5148_v10, %v5911_v50 }
 0xe93   :  { %2170 = vrot.lane.b32.xlu0 %v5848_v6, %s5458_s10 }
 0xe97   :  { %2627 = vrot.lane.b32.xlu0 %v5848_v6, %s5460_s14 }
 0xefa   :  { %v4906_v3 = vpop.f32.mrf.mxu0 }
 0xefb   :  { %v2432_v5 = vmul.f32 0.35355338, %v4906_v3  ;;  %v1759_v3 = vld [vmem:[%s6224_s13 + $0x10] sm:$0xff] }
 0xefc   :  { %v2422_v7 = vpop.f32.mrf.mxu0 }
 0xefd   :  { %v2431_v9 = vmul.f32 0.35355338, %v2422_v7  ;;  %v2434_v11 = vadd.f32 %v2432_v5, %v5677_v18  ;;  %v4489_v5 = vld [vmem:[#allocation16] ss:$0 sm:$0xff] }
 0xeff   :  { %v2438_v12 = vsel %vm420_vm2, %v2434_v11, -inf  ;;  %v2433_v13 = vadd.f32 %v2431_v9, %v5675_v15  ;;  %v1758_v15 = vld [vmem:[%s6224_s13 + $0x8] sm:$0xff] }
 0xf00   :  { %2439 = vmax.xlane.f32.xlu1 %v2438_v12 }
 0xf01   :  { %v2435_v14 = vsel %vm420_vm2, %v2433_v13, -inf }
 0xf02   :  { %v4875_v17 = vpop.f32.mrf.mxu1  ;;  %2436 = vmax.xlane.f32.xlu0 %v2435_v14 }
 0xf04   :  { %v1961_v19 = vpop.f32.mrf.mxu1 }
 0xf05   :  { %4878 = vmatprep.mubr.msk.f32.mxu1 %vm332_vm1, %v1961_v19 }
 0xf06   :  { %4879 = vmatmul.mubr.msk.f32.vlgmr.msra.gmra.mxu1 %vm332_vm1, %v4875_v17  ;;  %v2162_v20 = vpop.xlane.xlu0 %2161 }
 0xf07   :  { %4889 = vmatpush3.msra.mxu1 %v2173_v45  ;;  %5149 = vrcp.f32 %v2162_v20 }
 0xf0a   :  { %v2171_v18 = vpop.permute.xlu0 %2170 }
 0xf0b   :  { %4890 = vmatprep.subr.mxu1 %v2171_v18 }
 0xf0c   :  { %4891 = vmatpush3.msra.mxu1 %v2171_v18 }
 0xf0d   :  { %4895 = vmatprep.subr.mxu1 %v1758_v15 }
 0xf0e   :  { %v2628_v21 = vpop.permute.xlu0 %2627 }
 0xf0f   :  { %4923 = vmatprep.mubr.msk.f32.mxu0 %vm332_vm1, %v2628_v21  ;;  %v1760_v21 = vld [vmem:[%s6224_s13 + $0x18] sm:$0xff] }
 0xf10   :  { %4924 = vmatmul.mubr.msk.f32.vlgmr.msra.gmra.mxu0 %vm332_vm1, %v2630_v8  ;;  %v2917_v8 = vld [vmem:[%s6226_s15 + $0x18] sm:$0xff] }
 0xf11   :  { %2459 = vrot.lane.b32.xlu1 %v5846_v4, %s5461_s1  ;;  %4938 = vmatprep.subr.mxu0 %v2917_v8 }
 0xf12   :  { %4939 = vmatpush3.msra.mxu0 %v2917_v8  ;;  %v3262_v8 = vld [vmem:[%s6232_s21] sm:$0xff] }
 0xf14   :  { %v5150_v22 = vpop.eup %5149 }
 0xf15   :  { %v2168_v23 = vmul.f32 %v5150_v22, %v5146_v1 }
 0xf17   :  { %4892 = vmatprep.mubr.msk.f32.mxu1 %vm420_vm2, %v2168_v23 }
 0xf18   :  { %4893 = vmatmul.mubr.msk.f32.vlgmr.msra.gmra.mxu1 %vm420_vm2, %v2169_v24 }
 0xf19   :  { %4896 = vmatpush3.msra.mxu1 %v1758_v15 }
 0xf89   :  { %v2440_v25 = vpop.xlane.xlu1 %2439 }
 0xf8a   :  { %v2442_v26 = vsub.f32 %v2434_v11, %v2440_v25 }
 0xf8b   :  { %v2437_v27 = vpop.xlane.xlu0 %2436 }
 0xf8c   :  { %v2445_v28 = vmul.f32 1.442695, %v2442_v26  ;;  %v2441_v29 = vsub.f32 %v2433_v13, %v2437_v27 }
 0xf8d   :  { %v2460_v30 = vpop.permute.xlu1 %2459 }
 0xf8e   :  { %5151 = vpow2.f32 %v2445_v28  ;;  %v2443_v31 = vmul.f32 1.442695, %v2441_v29  ;;  %4907 = vmatprep.subr.mxu1 %v2460_v30  ;;  %v2916_v29 = vld [vmem:[%s6226_s15 + $0x10] sm:$0xff] }
 0xf8f   :  { %4940 = vmatprep.subr.mxu0 %v2916_v29 }
 0xf90   :  { %5153 = vpow2.f32 %v2443_v31  ;;  %4941 = vmatpush3.msra.mxu0 %v2916_v29  ;;  %v2914_v31 = vld [vmem:[%s6226_s15] sm:$0xff] }
 0xf9b   :  { %v5152_v32 = vpop.eup %5151 }
 0xf9c   :  { %v2450_v33 = vsel %vm420_vm2, %v5152_v32, 0.0 }
 0xf9d   :  { %v5154_v34 = vpop.eup %5153  ;;  %2451 = vadd.xlane.f32.xlu0 %v2450_v33  ;;  %v3014_v33 = vld [vmem:[%s6228_s17 + $0x30] sm:$0xff] }
 0xf9e   :  { %v2447_v35 = vsel %vm420_vm2, %v5154_v34, 0.0 }
 0xfa1   :  { %2448 = vadd.xlane.f32.xlu0 %v2447_v35  ;;  %v3012_v35 = vld [vmem:[%s6228_s17 + $0x20] sm:$0xff] }
 0xfb7   :  { %2457 = vrot.lane.b32.xlu0 %v5848_v6, %s5461_s1 }
 0xfc6   :  { %v4880_v38 = vpop.f32.mrf.mxu1 }
 0xfc7   :  { %v2052_v7 = vadd.f32 %v4880_v38, %v4489_v5 }
 0xfc8   :  { %v5951_v46 = vpop.f32.mrf.mxu1 }
 0xfc9   :  { %v2051_v10 = vadd.f32 %v4489_v5, %v5951_v46 }
 0xfd0   :  { %v4925_v36 = vpop.f32.mrf.mxu0 }
 0xfd1   :  { %v2719_v37 = vmul.f32 0.35355338, %v4925_v36 }
 0xfd2   :  { %v2709_v39 = vpop.f32.mrf.mxu0 }
 0xfd3   :  { %v2718_v40 = vmul.f32 0.35355338, %v2709_v39  ;;  %v2721_v42 = vadd.f32 %v5183_v41, %v2719_v37  ;;  %v3010_v41 = vld [vmem:[%s6228_s17 + $0x10] sm:$0xff] }
 0xfd5   :  { %v2725_v43 = vsel %vm420_vm2, %v2721_v42, -inf  ;;  %v2720_v45 = vadd.f32 %v5184_v44, %v2718_v40  ;;  %v3011_v40 = vld [vmem:[%s6228_s17 + $0x18] sm:$0xff]  ;;  %v4522_v44 = vld [vmem:[#allocation17] ss:$0 sm:$0xff] }
 0xfd6   :  { %2726 = vmax.xlane.f32.xlu0 %v2725_v43  ;;  %v3008_v43 = vld [vmem:[%s6228_s17] sm:$0xff] }
 0xfd7   :  { %v2722_v47 = vsel %vm420_vm2, %v2720_v45, -inf }
 0xfd8   :  { %v4894_v48 = vpop.f32.mrf.mxu1  ;;  %2723 = vmax.xlane.f32.xlu1 %v2722_v47 }
 0xfda   :  { %v2248_v49 = vpop.f32.mrf.mxu1 }
 0xfdb   :  { %4897 = vmatprep.mubr.msk.f32.mxu1 %vm332_vm1, %v2248_v49 }
 0xfdc   :  { %4898 = vmatmul.mubr.msk.f32.vlgmr.msra.gmra.mxu1 %vm332_vm1, %v4894_v48 }
 0xfdd   :  { %4908 = vmatpush3.msra.mxu1 %v2460_v30  ;;  %v2915_v30 = vld [vmem:[%s6226_s15 + $0x8] sm:$0xff] }
 0xfde   :  { %4942 = vmatprep.subr.mxu0 %v2915_v30 }
 0xfdf   :  { %4943 = vmatpush3.msra.mxu0 %v2915_v30 }
 0xfe0   :  { %4944 = vmatprep.subr.mxu0 %v2914_v31 }
 0xfe1   :  { %4945 = vmatpush3.msra.mxu0 %v2914_v31 }
0x1026   :  { %v2452_v50 = vpop.xlane.xlu0 %2451 }
0x1027   :  { %5155 = vrcp.f32 %v2452_v50 }
0x102a   :  { %v2449_v51 = vpop.xlane.xlu0 %2448 }
0x102b   :  { %5157 = vrcp.f32 %v2449_v51  ;;  %v5463_v51 = vmov 0.0  }
0x102c   :  { %4968 = vmatprep.subr.mxu0 %v5463_v51 }
0x102e   :  { %v2458_v52 = vpop.permute.xlu0 %2457 }
0x102f   :  { %4909 = vmatprep.subr.mxu1 %v2458_v52 }
0x1030   :  { %4910 = vmatpush3.msra.mxu1 %v2458_v52  ;;  %v4525_v52 = vld [vmem:[#allocation19] ss:$0 sm:$0xff] }
0x1031   :  { %4914 = vmatprep.subr.mxu1 %v1759_v3 }
0x1034   :  { %v5156_v53 = vpop.eup %5155 }
0x1035   :  { %v2456_v56 = vmul.f32 %v5156_v53, %v5152_v32  ;;  %v3015_v32 = vld [vmem:[%s6228_s17 + $0x38] sm:$0xff] }
0x1038   :  { %v5158_v54 = vpop.eup %5157 }
0x1039   :  { %v2455_v55 = vmul.f32 %v5158_v54, %v5154_v34  ;;  %v3013_v34 = vld [vmem:[%s6228_s17 + $0x28] sm:$0xff] }
0x103b   :  { %4911 = vmatprep.mubr.msk.f32.mxu1 %vm420_vm2, %v2455_v55 }
0x103c   :  { %4912 = vmatmul.mubr.msk.f32.vlgmr.msra.gmra.mxu1 %vm420_vm2, %v2456_v56 }
0x103d   :  { %4915 = vmatpush3.msra.mxu1 %v1759_v3 }
0x105f   :  { %v2727_v57 = vpop.xlane.xlu0 %2726 }
0x1060   :  { %v2729_v58 = vsub.f32 %v2721_v42, %v2727_v57  ;;  %v3009_v42 = vld [vmem:[%s6228_s17 + $0x8] sm:$0xff]  ;;  %v3104_v57 = vld [vmem:[#allocation7] sm:$0x3] }
0x1061   :  { %v2724_v59 = vpop.xlane.xlu1 %2723 }
0x1062   :  { %v2732_v60 = vmul.f32 1.442695, %v2729_v58  ;;  %v2728_v61 = vsub.f32 %v2720_v45, %v2724_v59  ;;  %v3181_v58 = vld [vmem:[%s6230_s19 + $0x18] sm:$0xff]  ;;  %v3180_v59 = vld [vmem:[%s6230_s19 + $0x10] sm:$0xff] }
0x1064   :  { %5159 = vpow2.f32 %v2732_v60  ;;  %v2730_v62 = vmul.f32 1.442695, %v2728_v61  ;;  %v3179_v60 = vld [vmem:[%s6230_s19 + $0x8] sm:$0xff]  ;;  %v3178_v61 = vld [vmem:[%s6230_s19] sm:$0xff] }
0x1066   :  { %5161 = vpow2.f32 %v2730_v62 }
0x1071   :  { %v5160_v63 = vpop.eup %5159 }
0x1072   :  { %v2737_v0 = vsel %vm420_vm2, %v5160_v63, 0.0 }
0x1073   :  { %v5162_v1 = vpop.eup %5161  ;;  %2738 = vadd.xlane.f32.xlu0 %v2737_v0  ;;  %v4529_v0 = vld [vmem:[%s6231_s20] ss:$0 sm:$0xff] }
0x1074   :  { %v2734_v2 = vsel %vm420_vm2, %v5162_v1, 0.0 }
0x1075   :  { %2735 = vadd.xlane.f32.xlu1 %v2734_v2 }
0x1086   :  { %2746 = vrot.lane.b32.xlu1 %v5846_v4, %s6271_s27 }
0x1089   :  { %2744 = vrot.lane.b32.xlu0 %v5848_v6, %s6271_s27 }
0x109c   :  { %v4899_v9 = vpop.f32.mrf.mxu1 }
0x109d   :  { %v2339_v11 = vadd.f32 %v4899_v9, %v2052_v7 }
0x109e   :  { %v2329_v12 = vpop.f32.mrf.mxu1 }
0x109f   :  { %v2338_v23 = vadd.f32 %v2329_v12, %v2051_v10 }
0x10fc   :  { %v4913_v13 = vpop.f32.mrf.mxu1  ;;  %v2739_v14 = vpop.xlane.xlu0 %2738 }
0x10fd   :  { %5163 = vrcp.f32 %v2739_v14 }
0x10fe   :  { %v2736_v16 = vpop.xlane.xlu1 %2735  ;;  %v2535_v17 = vpop.f32.mrf.mxu1 }
0x10ff   :  { %5165 = vrcp.f32 %v2736_v16  ;;  %4916 = vmatprep.mubr.msk.f32.mxu1 %vm332_vm1, %v2535_v17 }
0x1100   :  { %4917 = vmatmul.mubr.msk.f32.vlgmr.msra.gmra.mxu1 %vm332_vm1, %v4913_v13  ;;  %v2745_v4 = vpop.permute.xlu0 %2744 }
0x1102   :  { %v2747_v19 = vpop.permute.xlu1 %2746 }
0x1103   :  { %4926 = vmatprep.subr.mxu1 %v2747_v19 }
0x1104   :  { %4927 = vmatpush3.msra.mxu1 %v2747_v19 }
0x1105   :  { %4928 = vmatprep.subr.mxu1 %v2745_v4 }
0x1106   :  { %4929 = vmatpush3.msra.mxu1 %v2745_v4 }
0x1107   :  { %4933 = vmatprep.subr.mxu1 %v1760_v21 }
0x110a   :  { %v5164_v6 = vpop.eup %5163 }
0x110b   :  { %v2743_v15 = vmul.f32 %v5164_v6, %v5160_v63 }
0x110c   :  { %v5166_v20 = vpop.eup %5165 }
0x110d   :  { %v2742_v18 = vmul.f32 %v5166_v20, %v5162_v1 }
0x110f   :  { %4930 = vmatprep.mubr.msk.f32.mxu1 %vm420_vm2, %v2742_v18 }
0x1110   :  { %4931 = vmatmul.mubr.msk.f32.vlgmr.msra.gmra.mxu1 %vm420_vm2, %v2743_v15 }
0x1111   :  { %4934 = vmatpush3.msra.mxu1 %v1760_v21 }
0x1112   :  { %4949 = vmatprep.subr.mxu1 %v3015_v32 }
0x11c0   :  { %v4918_v22 = vpop.f32.mrf.mxu1 }
0x11c1   :  { %v2626_v24 = vadd.f32 %v4918_v22, %v2339_v11 }
0x11c2   :  { %v2616_v25 = vpop.f32.mrf.mxu1 }
0x11c3   :  { %v2625_v26 = vadd.f32 %v2616_v25, %v2338_v23 }
0x11d0   :  { %v4932_v27 = vpop.f32.mrf.mxu1 }
0x11d2   :  { %v2822_v28 = vpop.f32.mrf.mxu1 }
0x11d3   :  { %4935 = vmatprep.mubr.msk.f32.mxu1 %vm332_vm1, %v2822_v28 }
0x11d4   :  { %4936 = vmatmul.mubr.msk.f32.vlgmr.msra.gmra.mxu1 %vm332_vm1, %v4932_v27 }
0x11d5   :  { %4950 = vmatpush3.msra.mxu1 %v3015_v32 }
0x11d6   :  { %4951 = vmatprep.subr.mxu1 %v3014_v33 }
0x11d7   :  { %4952 = vmatpush3.msra.mxu1 %v3014_v33 }
0x11d8   :  { %4953 = vmatprep.subr.mxu1 %v3013_v34 }
0x11d9   :  { %4954 = vmatpush3.msra.mxu1 %v3013_v34 }
0x11da   :  { %4955 = vmatprep.subr.mxu1 %v3012_v35 }
0x11db   :  { %4956 = vmatpush3.msra.mxu1 %v3012_v35 }
0x11dc   :  { %4957 = vmatprep.subr.mxu1 %v3011_v40 }
0x11dd   :  { %4958 = vmatpush3.msra.mxu1 %v3011_v40  ;;  %v3263_v40 = vld [vmem:[%s6232_s21 + $0x8] sm:$0xff] }
0x11de   :  { %4959 = vmatprep.subr.mxu1 %v3010_v41 }
0x11df   :  { %4960 = vmatpush3.msra.mxu1 %v3010_v41 }
0x11e0   :  { %4961 = vmatprep.subr.mxu1 %v3009_v42 }
0x11e1   :  { %4962 = vmatpush3.msra.mxu1 %v3009_v42 }
0x11e2   :  { %4963 = vmatprep.subr.mxu1 %v3008_v43 }
0x11e3   :  { %4964 = vmatpush3.msra.mxu1 %v3008_v43 }
0x11e4   :  { %4986 = vmatprep.subr.mxu1 %v5463_v51 }
0x1294   :  { %v4937_v36 = vpop.f32.mrf.mxu1 }
0x1295   :  { %v2913_v39 = vadd.f32 %v4937_v36, %v2626_v24 }
0x1296   :  { %v2903_v37 = vpop.f32.mrf.mxu1 }
0x1297   :  { %v2912_v38 = vadd.f32 %v2903_v37, %v2625_v26 }
0x1299   :  { %4946 = vmatprep.mubr.msk.f32.mxu0 %vm233_vm0, %v2912_v38 }
0x129a   :  { %4947 = vmatmul.mubr.msk.f32.vlgmr.msra.gmra.mxu0 %vm233_vm0, %v2913_v39 }
0x129b   :  { %4972 = vmatprep.mubr.msk.f32.mxu0 %vm5464_vm4, %v5463_v51 }
0x135a   :  { %v4948_v45 = vpop.f32.mrf.mxu0 }
0x135b   :  { %v3003_v46 = vadd.f32 %v4948_v45, %v4522_v44 }
0x135c   :  { %v2997_v47 = vpop.f32.mrf.mxu0 }
0x135d   :  { %v2998_v48 = vadd.f32 %v4522_v44, %v2997_v47  ;;  %v3007_v50 = vmax.f32 %v3003_v46, 0.0 }
0x135f   :  { %v3006_v49 = vmax.f32 %v2998_v48, 0.0 }
0x1361   :  { %4965 = vmatprep.mubr.msk.f32.mxu1 %vm1583_vm3, %v3006_v49 }
0x1362   :  { %4966 = vmatmul.mubr.msk.f32.vlgmr.msra.gmra.mxu1 %vm1583_vm3, %v3007_v50 }
0x1363   :  { %4988 = vmatprep.mubr.msk.f32.mxu1 %vm5464_vm4, %v5463_v51 }
0x1422   :  { %v4967_v53 = vpop.f32.mrf.mxu1 }
0x1423   :  { %v3101_v54 = vadd.f32 %v4967_v53, %v4525_v52  ;;  %v4531_v53 = vld [vmem:[%s6233_s22] ss:$0 sm:$0xff] }
0x1424   :  { %v3095_v55 = vpop.f32.mrf.mxu1 }
0x1425   :  { %v3096_v56 = vadd.f32 %v4525_v52, %v3095_v55  ;;  %4969 = vmatpush3.msra.mxu0 %v3101_v54 }
0x1426   :  { %4970 = vmatprep.subr.mxu0 %v5463_v51 }
0x1427   :  { %4971 = vmatpush3.msra.mxu0 %v3096_v56 }
0x1428   :  { %4973 = vmatmul.mubr.msk.f32.vlgmr.msra.gmra.mxu0 %vm420_vm2, %v3104_v57  ;;  %4975 = vmatprep.subr.mxu0 %v5463_v51 }
0x1429   :  { %4976 = vmatpush3.msra.mxu0 %v3181_v58  ;;  %4983 = vmatprep.mubr.msk.f32.mxu0 %vm5464_vm4, %v5463_v51 }
0x142a   :  { %4977 = vmatprep.subr.mxu0 %v5463_v51 }
0x142b   :  { %4978 = vmatpush3.msra.mxu0 %v3180_v59 }
0x142c   :  { %4979 = vmatprep.subr.mxu0 %v5463_v51 }
0x142d   :  { %4980 = vmatpush3.msra.mxu0 %v3179_v60 }
0x142e   :  { %4981 = vmatprep.subr.mxu0 %v5463_v51 }
0x142f   :  { %4982 = vmatpush3.msra.mxu0 %v3178_v61 }
0x1430   :  { %4991 = vmatprep.subr.mxu0 %v5463_v51 }
0x14e8   :  { %v3174_v62 = vpop.f32.mrf.mxu0 }
0x14e9   :  { %4984 = vmatmul.mubr.msk.f32.vlgmr.msra.gmra.mxu0 %vm233_vm0, %v3174_v62 }
0x14ea   :  { %v4974_v63 = vpop.f32.mrf.mxu0  ;;  %4993 = vmatprep.mubr.msk.f32.mxu0 %vm5464_vm4, %v5463_v51 }
0x15a9   :  { %v3258_v1 = vpop.f32.mrf.mxu0 }
0x15aa   :  { %v6050_v2 = vadd.f32 %v4529_v0, %v3258_v1  ;;  %v3264_v0 = vld [vmem:[%s6232_s21 + $0x10] sm:$0xff] }
0x15ab   :  { %v4985_v3 = vpop.f32.mrf.mxu0 }
0x15ac   :  { %3274 = vrot.lane.b32.xlu1 %v6050_v2, %s5452_s16 }
0x161e   :  { %v3275_v5 = vpop.permute.xlu1 %3274 }
0x161f   :  { %4987 = vmatpush3.xpose.msk.msra.mxu1 %vm332_vm1, %v3275_v5 }
0x1620   :  { %4996 = vmatprep.subr.mxu1 %v5463_v51 }
0x1622   :  { %4989 = vmatmul.mubr.msk.f32.vlgmr.msra.gmra.mxu1 %vm332_vm1, %v6050_v2 }
0x1623   :  { %4998 = vmatprep.mubr.msk.f32.mxu1 %vm5464_vm4, %v5463_v51  ;;  %4997 = vmatpush3.msra.mxu1 %v3262_v8  ;;  %v4242_v8 = vld [vmem:[%s6234_s23 + $0x18] sm:$0xff] }
0x1624   :  { %5006 = vmatprep.subr.mxu1 %v5463_v51 }
0x16e2   :  { %v3346_v7 = vpop.f32.mrf.mxu1 }
0x16e3   :  { %v3350_v9 = vmul.f32 0.35355338, %v3346_v7 }
0x16e4   :  { %v4990_v11 = vpop.f32.mrf.mxu1 }
0x16e5   :  { %v3352_v12 = vsel %vm3351_vm5, %v3350_v9, -inf }
0x16e6   :  { %3353 = vmax.xlane.f32.xlu1 %v3352_v12 }
0x16f7   :  { %3518 = vrot.lane.b32.xlu1 %v6050_v2, %s5455_s9 }
0x16fb   :  { %3516 = vrot.lane.b32.xlu1 %v6050_v2, %s5454_s3 }
0x176f   :  { %v3354_v13 = vpop.xlane.xlu1 %3353 }
0x1770   :  { %v3355_v14 = vsub.f32 %v3350_v9, %v3354_v13 }
0x1772   :  { %v3356_v16 = vmul.f32 1.442695, %v3355_v14 }
0x1773   :  { %v3519_v18 = vpop.permute.xlu1 %3518 }
0x1774   :  { %5167 = vpow2.f32 %v3356_v16 }
0x1777   :  { %v3517_v21 = vpop.permute.xlu1 %3516 }
0x1781   :  { %v5168_v17 = vpop.eup %5167 }
0x1782   :  { %v3358_v19 = vsel %vm3351_vm5, %v5168_v17, 0.0 }
0x1783   :  { %3359 = vadd.xlane.f32.xlu0 %v3358_v19 }
0x1799   :  { %3363 = vrot.lane.b32.xlu0 %v6050_v2, %s5453_s7 }
0x180c   :  { %v3360_v4 = vpop.xlane.xlu0 %3359 }
0x180d   :  { %5169 = vrcp.f32 %v3360_v4  ;;  %v3265_v4 = vld [vmem:[%s6232_s21 + $0x18] sm:$0xff] }
0x1810   :  { %v3364_v6 = vpop.permute.xlu0 %3363 }
0x1811   :  { %4992 = vmatpush3.msk.msra.mxu0 %vm3369_vm6, %v3364_v6 }
0x1812   :  { %5001 = vmatprep.subr.mxu0 %v5463_v51 }
0x181a   :  { %v5170_v20 = vpop.eup %5169 }
0x181b   :  { %v3362_v15 = vmul.f32 %v5170_v20, %v5168_v17 }
0x181d   :  { %4994 = vmatmul.mubr.msk.f32.vlgmr.msra.gmra.mxu0 %vm3365_vm7, %v3362_v15 }
0x181e   :  { %5002 = vmatpush3.xpose.msk.msra.mxu0 %vm332_vm1, %v3519_v18  ;;  %5003 = vmatprep.mubr.msk.f32.mxu0 %vm5464_vm4, %v5463_v51 }
0x181f   :  { %5011 = vmatprep.subr.mxu0 %v5463_v51 }
0x1821   :  { %5004 = vmatmul.mubr.msk.f32.vlgmr.msra.gmra.mxu0 %vm332_vm1, %v3517_v21 }
0x1822   :  { %5013 = vmatprep.mubr.msk.f32.mxu0 %vm5464_vm4, %v5463_v51  ;;  %5012 = vmatpush3.msra.mxu0 %v3263_v40 }
0x1823   :  { %5021 = vmatprep.subr.mxu0 %v5463_v51 }
0x18dd   :  { %v3438_v10 = vpop.f32.mrf.mxu0 }
0x18de   :  { %4999 = vmatmul.mubr.msk.f32.vlgmr.msra.gmra.mxu1 %vm332_vm1, %v3438_v10  ;;  %v4241_v10 = vld [vmem:[%s6234_s23 + $0x10] sm:$0xff] }
0x18df   :  { %v4995_v22 = vpop.f32.mrf.mxu0  ;;  %5008 = vmatprep.mubr.msk.f32.mxu1 %vm5464_vm4, %v5463_v51 }
0x18e1   :  { %v3590_v23 = vpop.f32.mrf.mxu0 }
0x18e2   :  { %v3594_v24 = vmul.f32 0.35355338, %v3590_v23 }
0x18e3   :  { %v5005_v25 = vpop.f32.mrf.mxu0 }
0x18e4   :  { %v3595_v26 = vsel %vm3351_vm5, %v3594_v24, -inf  ;;  %v4239_v25 = vld [vmem:[%s6234_s23] sm:$0xff] }
0x18e5   :  { %3596 = vmax.xlane.f32.xlu0 %v3595_v26  ;;  %v4331_v26 = vld [vmem:[%s6236_s25 + $0x38] sm:$0xff] }
0x18fb   :  { %3606 = vrot.lane.b32.xlu0 %v6050_v2, %s5458_s10 }
0x18ff   :  { %3757 = vrot.lane.b32.xlu0 %v6050_v2, %s5457_s8 }
0x196e   :  { %v3597_v27 = vpop.xlane.xlu0 %3596 }
0x196f   :  { %v3598_v28 = vsub.f32 %v3594_v24, %v3597_v27  ;;  %v4240_v24 = vld [vmem:[%s6234_s23 + $0x8] sm:$0xff]  ;;  %v4330_v27 = vld [vmem:[%s6236_s25 + $0x30] sm:$0xff] }
0x1971   :  { %v3599_v29 = vmul.f32 1.442695, %v3598_v28  ;;  %v4329_v28 = vld [vmem:[%s6236_s25 + $0x28] sm:$0xff] }
0x1972   :  { %v3607_v30 = vpop.permute.xlu0 %3606 }
0x1973   :  { %5171 = vpow2.f32 %v3599_v29  ;;  %5007 = vmatpush3.msk.msra.mxu1 %vm3369_vm6, %v3607_v30  ;;  %v4328_v29 = vld [vmem:[%s6236_s25 + $0x20] sm:$0xff]  ;;  %v4327_v30 = vld [vmem:[%s6236_s25 + $0x18] sm:$0xff] }
0x1974   :  { %5016 = vmatprep.subr.mxu1 %v5463_v51 }
0x1976   :  { %v3758_v39 = vpop.permute.xlu0 %3757 }
0x1980   :  { %v5172_v31 = vpop.eup %5171 }
0x1981   :  { %v3601_v32 = vsel %vm3351_vm5, %v5172_v31, 0.0 }
0x1982   :  { %3602 = vadd.xlane.f32.xlu1 %v3601_v32 }
0x1993   :  { %3759 = vrot.lane.b32.xlu1 %v6050_v2, %s5456_s4 }
0x199e   :  { %v3511_v33 = vpop.f32.mrf.mxu1 }
0x199f   :  { %v3515_v54 = vadd.f32 %v4531_v53, %v3511_v33 }
0x19a0   :  { %v5000_v34 = vpop.f32.mrf.mxu1 }
0x19a1   :  { %v4326_v34 = vld [vmem:[%s6236_s25 + $0x10] sm:$0xff] }
0x1a0b   :  { %v3603_v35 = vpop.xlane.xlu1 %3602 }
0x1a0c   :  { %5173 = vrcp.f32 %v3603_v35  ;;  %v4325_v35 = vld [vmem:[%s6236_s25 + $0x8] sm:$0xff] }
0x1a0f   :  { %v3760_v38 = vpop.permute.xlu1 %3759 }
0x1a19   :  { %v5174_v36 = vpop.eup %5173 }
0x1a1a   :  { %v3605_v37 = vmul.f32 %v5174_v36, %v5172_v31  ;;  %v4324_v36 = vld [vmem:[%s6236_s25] sm:$0xff] }
0x1a1c   :  { %5009 = vmatmul.mubr.msk.f32.vlgmr.msra.gmra.mxu1 %vm3365_vm7, %v3605_v37  ;;  %v4552_v37 = vld [vmem:[%s6235_s24] ss:$0 sm:$0xff]  ;;  %s5465_s24 = smov [#allocation20]  }
0x1a1d   :  { %5017 = vmatpush3.xpose.msk.msra.mxu1 %vm332_vm1, %v3760_v38  ;;  %5018 = vmatprep.mubr.msk.f32.mxu1 %vm5464_vm4, %v5463_v51  ;;  %s4430_s25 = sshll.u32 %s5465_s24, 4  ;;  %s4431_s25 = int_to_ptr.vmem [resolvable:$true] %s4430_s25 }
0x1a1e   :  { %5026 = vmatprep.subr.mxu1 %v5463_v51  ;;  %p5410_p0 = scmp.lt.s32.totalorder %s4431_s25, %s4431_s25 }
0x1a20   :  { %5019 = vmatmul.mubr.msk.f32.vlgmr.msra.gmra.mxu1 %vm332_vm1, %v3758_v39 }
0x1a21   :  { %5028 = vmatprep.mubr.msk.f32.mxu1 %vm5464_vm4, %v5463_v51  ;;  %5027 = vmatpush3.msra.mxu1 %v3264_v0 }
0x1a22   :  { %5036 = vmatprep.subr.mxu1 %v5463_v51 }
0x1adc   :  { %v3679_v41 = vpop.f32.mrf.mxu1 }
0x1add   :  { %5014 = vmatmul.mubr.msk.f32.vlgmr.msra.gmra.mxu0 %vm332_vm1, %v3679_v41 }
0x1ade   :  { %v5010_v42 = vpop.f32.mrf.mxu1  ;;  %5023 = vmatprep.mubr.msk.f32.mxu0 %vm5464_vm4, %v5463_v51 }
0x1adf   :  { %v4554_v42 = vld [vmem:[%s6237_s26] ss:$0 sm:$0xff]  ;;  %s5409_s26 = scalar_lea.vmem %s4431_s25, 32 }
0x1ae0   :  { %v3831_v43 = vpop.f32.mrf.mxu1 }
0x1ae1   :  { %v3835_v44 = vmul.f32 0.35355338, %v3831_v43 }
0x1ae2   :  { %v5020_v45 = vpop.f32.mrf.mxu1 }
0x1ae3   :  { %v3836_v46 = vsel %vm3351_vm5, %v3835_v44, -inf }
0x1ae4   :  { %3837 = vmax.xlane.f32.xlu1 %v3836_v46 }
0x1af5   :  { %4000 = vrot.lane.b32.xlu1 %v6050_v2, %s5459_s29  ;;  %s5405_s29 = scalar_lea.vmem %s4431_s25, 16 }
0x1af6   :  { %p5406_p13 = scmp.ne.s32.totalorder %s4431_s25, %s5405_s29  ;;  %p5411_p1 = scmp.lt.s32.totalorder %s5409_s26, %s5405_s29 }
0x1af8   :  { %p5412_p2 = por %p5411_p1, %p5410_p0 }
0x1af9   :  { %3998 = vrot.lane.b32.xlu1 %v6050_v2, %s5460_s14 }
0x1afa   :  { %p5413_p3 = pnand %p5412_p2, %p5406_p13 }
0x1b6d   :  { %v3838_v47 = vpop.xlane.xlu1 %3837 }
0x1b6e   :  { %v3839_v48 = vsub.f32 %v3835_v44, %v3838_v47 }
0x1b70   :  { %v3840_v49 = vmul.f32 1.442695, %v3839_v48 }
0x1b71   :  { %v4001_v61 = vpop.permute.xlu1 %4000 }
0x1b72   :  { %5175 = vpow2.f32 %v3840_v49 }
0x1b75   :  { %v3999_v63 = vpop.permute.xlu1 %3998 }
0x1b7f   :  { %v5176_v50 = vpop.eup %5175 }
0x1b80   :  { %v3842_v52 = vsel %vm3351_vm5, %v5176_v50, 0.0 }
0x1b81   :  { %3843 = vadd.xlane.f32.xlu0 %v3842_v52 }
0x1b97   :  { %3847 = vrot.lane.b32.xlu0 %v6050_v2, %s5461_s1 }
0x1b9d   :  { %v3752_v55 = vpop.f32.mrf.mxu0 }
0x1b9e   :  { %v3756_v56 = vadd.f32 %v3752_v55, %v3515_v54 }
0x1b9f   :  { %v5015_v57 = vpop.f32.mrf.mxu0 }
0x1c0a   :  { %v3844_v58 = vpop.xlane.xlu0 %3843 }
0x1c0b   :  { %5177 = vrcp.f32 %v3844_v58 }
0x1c0e   :  { %v3848_v59 = vpop.permute.xlu0 %3847 }
0x1c0f   :  { %5022 = vmatpush3.msk.msra.mxu0 %vm3369_vm6, %v3848_v59 }
0x1c10   :  { %5031 = vmatprep.subr.mxu0 %v5463_v51 }
0x1c18   :  { %v5178_v60 = vpop.eup %5177 }
0x1c19   :  { %v3846_v62 = vmul.f32 %v5178_v60, %v5176_v50 }
0x1c1b   :  { %5024 = vmatmul.mubr.msk.f32.vlgmr.msra.gmra.mxu0 %vm3365_vm7, %v3846_v62 }
0x1c1c   :  { %5032 = vmatpush3.xpose.msk.msra.mxu0 %vm332_vm1, %v4001_v61  ;;  %5033 = vmatprep.mubr.msk.f32.mxu0 %vm5464_vm4, %v5463_v51 }
0x1c1d   :  { %5041 = vmatprep.subr.mxu0 %v5463_v51 }
0x1c1f   :  { %5034 = vmatmul.mubr.msk.f32.vlgmr.msra.gmra.mxu0 %vm332_vm1, %v3999_v63 }
0x1c20   :  { %5043 = vmatprep.mubr.msk.f32.mxu0 %vm5464_vm4, %v5463_v51  ;;  %5042 = vmatpush3.msra.mxu0 %v3265_v4 }
0x1c21   :  { %5057 = vmatprep.subr.mxu0 %v5463_v51 }
0x1cdb   :  { %v3920_v1 = vpop.f32.mrf.mxu0 }
0x1cdc   :  { %5029 = vmatmul.mubr.msk.f32.vlgmr.msra.gmra.mxu1 %vm332_vm1, %v3920_v1 }
0x1cdd   :  { %v5025_v3 = vpop.f32.mrf.mxu0  ;;  %5038 = vmatprep.mubr.msk.f32.mxu1 %vm5464_vm4, %v5463_v51 }
0x1cdf   :  { %v4072_v5 = vpop.f32.mrf.mxu0 }
0x1ce0   :  { %v4076_v7 = vmul.f32 0.35355338, %v4072_v5 }
0x1ce1   :  { %v5035_v9 = vpop.f32.mrf.mxu0 }
0x1ce2   :  { %v4077_v11 = vsel %vm3351_vm5, %v4076_v7, -inf }
0x1ce3   :  { %4078 = vmax.xlane.f32.xlu0 %v4077_v11 }
0x1cf9   :  { %4088 = vrot.lane.b32.xlu0 %v6050_v2, %s6271_s27 }
0x1d6c   :  { %v4079_v12 = vpop.xlane.xlu0 %4078 }
0x1d6d   :  { %v4080_v13 = vsub.f32 %v4076_v7, %v4079_v12 }
0x1d6f   :  { %v4081_v14 = vmul.f32 1.442695, %v4080_v13 }
0x1d70   :  { %v4089_v16 = vpop.permute.xlu0 %4088 }
0x1d71   :  { %5179 = vpow2.f32 %v4081_v14  ;;  %5037 = vmatpush3.msk.msra.mxu1 %vm3369_vm6, %v4089_v16 }
0x1d72   :  { %5046 = vmatprep.subr.mxu1 %v5463_v51 }
0x1d7e   :  { %v5180_v17 = vpop.eup %5179 }
0x1d7f   :  { %v4083_v19 = vsel %vm3351_vm5, %v5180_v17, 0.0 }
0x1d80   :  { %4084 = vadd.xlane.f32.xlu1 %v4083_v19 }
0x1d9c   :  { %v3993_v6 = vpop.f32.mrf.mxu1 }
0x1d9d   :  { %v3997_v2 = vadd.f32 %v3993_v6, %v3756_v56 }
0x1d9e   :  { %v5030_v20 = vpop.f32.mrf.mxu1 }
0x1e09   :  { %v4085_v18 = vpop.xlane.xlu1 %4084 }
0x1e0a   :  { %5181 = vrcp.f32 %v4085_v18 }
0x1e17   :  { %v5182_v15 = vpop.eup %5181 }
0x1e18   :  { %v4087_v21 = vmul.f32 %v5182_v15, %v5180_v17 }
0x1e1a   :  { %5039 = vmatmul.mubr.msk.f32.vlgmr.msra.gmra.mxu1 %vm3365_vm7, %v4087_v21 }
0x1e1b   :  { %5054 = vmatprep.mubr.msk.f32.mxu1 %vm5464_vm4, %v5463_v51  ;;  %5047 = vmatpush3.msra.mxu1 %v4242_v8 }
0x1e1c   :  { %5048 = vmatprep.subr.mxu1 %v5463_v51 }
0x1e1d   :  { %5049 = vmatpush3.msra.mxu1 %v4241_v10 }
0x1e1e   :  { %5050 = vmatprep.subr.mxu1 %v5463_v51 }
0x1e1f   :  { %5051 = vmatpush3.msra.mxu1 %v4240_v24 }
0x1e20   :  { %5052 = vmatprep.subr.mxu1 %v5463_v51 }
0x1e21   :  { %5053 = vmatpush3.msra.mxu1 %v4239_v25 }
0x1eda   :  { %v4161_v22 = vpop.f32.mrf.mxu1 }
0x1edb   :  { %5044 = vmatmul.mubr.msk.f32.vlgmr.msra.gmra.mxu0 %vm332_vm1, %v4161_v22 }
0x1edc   :  { %v5040_v23 = vpop.f32.mrf.mxu1  ;;  %5073 = vmatprep.mubr.msk.f32.mxu0 %vm5464_vm4, %v5463_v51  ;;  %5058 = vmatpush3.msra.mxu0 %v4331_v26 }
0x1edd   :  { %5059 = vmatprep.subr.mxu0 %v5463_v51 }
0x1ede   :  { %5060 = vmatpush3.msra.mxu0 %v4330_v27 }
0x1edf   :  { %5061 = vmatprep.subr.mxu0 %v5463_v51 }
0x1ee0   :  { %5062 = vmatpush3.msra.mxu0 %v4329_v28 }
0x1ee1   :  { %5063 = vmatprep.subr.mxu0 %v5463_v51 }
0x1ee2   :  { %5064 = vmatpush3.msra.mxu0 %v4328_v29 }
0x1ee3   :  { %5065 = vmatprep.subr.mxu0 %v5463_v51 }
0x1ee4   :  { %5066 = vmatpush3.msra.mxu0 %v4327_v30 }
0x1ee5   :  { %5067 = vmatprep.subr.mxu0 %v5463_v51 }
0x1ee6   :  { %5068 = vmatpush3.msra.mxu0 %v4326_v34 }
0x1ee7   :  { %5069 = vmatprep.subr.mxu0 %v5463_v51 }
0x1ee8   :  { %5070 = vmatpush3.msra.mxu0 %v4325_v35 }
0x1ee9   :  { %5071 = vmatprep.subr.mxu0 %v5463_v51 }
0x1eea   :  { %5072 = vmatpush3.msra.mxu0 %v4324_v36 }
0x1f9b   :  { %v4234_v31 = vpop.f32.mrf.mxu0 }
0x1f9c   :  { %v4238_v32 = vadd.f32 %v4234_v31, %v3997_v2 }
0x1f9d   :  { %v5045_v33 = vpop.f32.mrf.mxu0 }
0x1f9e   :  { %5055 = vmatmul.mubr.msk.f32.vlgmr.msra.gmra.mxu1 %vm233_vm0, %v4238_v32 }
0x205e   :  { %v4319_v38 = vpop.f32.mrf.mxu1 }
0x205f   :  { %v4320_v39 = vadd.f32 %v4552_v37, %v4319_v38 }
0x2060   :  { %v5056_v40 = vpop.f32.mrf.mxu1 }
0x2061   :  { %v4323_v41 = vmax.f32 %v4320_v39, 0.0 }
0x2063   :  { %5074 = vmatmul.mubr.msk.f32.vlgmr.msra.gmra.mxu0 %vm1583_vm3, %v4323_v41 }
0x2123   :  { %v4408_v43 = vpop.f32.mrf.mxu0 }
0x2124   :  { %v4409_v44 = vadd.f32 %v4554_v42, %v4408_v43 }
0x2125   :  { %v5075_v45 = vpop.f32.mrf.mxu0 }
0x2126   :  { %v4413_v51 = vsel %vm4412_vm8, %v4409_v44, 0.0 }
0x2127   :  { %v4414_v46 = vrot.slane %v4413_v51, 4 }
0x2129   :  { %v4415_v47 = vadd.f32 %v4414_v46, %v4413_v51 }
0x212b   :  { %v4416_v48 = vrot.slane %v4415_v47, 2 }
0x212d   :  { %v4417_v49 = vadd.f32 %v4416_v48, %v4415_v47 }
0x212f   :  { %v4418_v50 = vrot.slane %v4417_v49, 1 }
0x2131   :  { %v4419_v52 = vadd.f32 %v4418_v50, %v4417_v49 }
0x2133   :  { %v4421_v53 = vmul.f32 0.5, %v4419_v52 }
0x2135   :  { %4423 = vst.msk [vmem:[#allocation20] sm:$0x1] %vm4422_vm9, %v4421_v53 }
0x2136   :  { %5416 = shalt.err (!%p5413_p3)
}
0x2137   :  { %s6272_s1 = sld [smem:[#allocation40_spill]] }
0x213d   :  { %4433 = dma.vmem_to_hbm [thread:$0]  %s4431_s25, 16, %s6272_s1, [#allocation4]  }
0x213e   :  { %5437 = dma.done.wait [#allocation4], 16  }
0x213f   :  { %5438 = vsyncadd [#allocation4], 4294967280 }
0x2140   :  { %4437 = vsyncpa [#allocation3], 1 }
0x2141   :  { %4438 = vsyncpa [#allocation6], 1 }
0x2142   :  { %4439 = vsyncpa [#allocation9], 1 }
0x2143   :  { %4440 = vsyncpa [#allocation12], 1 }
0x2144   :  { %4441 = vsyncpa [#allocation15], 1 }
0x2145   :  { %4442 = vsyncpa [#allocation18], 1 }
0x2146   :  { %4443 = vsyncpa [#allocation4], 1 }

</bundles_post_ra>
